<compile_context>
chip_gen: v7x
topology: tpu7x:2x2x1
jax: 0.10.0
libtpu: 0.0.40
codegen_flags: <defaults>
</compile_context>

<pallas_src>
import math

import jax
import jax.numpy as jnp
from jax.experimental import pallas as pl
from jax.experimental.pallas import tpu as pltpu

# ---- small synthetic config (mirrors BertModel + regressor head) --------------------
B, S, H = 2, 8, 32          # batch, seq, bert hidden_size
NUM_HEADS = 2
HEAD_DIM = H // NUM_HEADS
INTER = 4 * H               # BERT intermediate size
REG_H = 32                  # config.hidden_size of the regressor
NUM_LAYERS = 2
VOCAB = 64
MAX_POS = 16
LN_EPS = 1e-12
ATTN_SCALE = 1.0 / math.sqrt(HEAD_DIM)
ROWS = B * S                # folded (batch*seq) rows per program

_WEIGHT_NAMES = ('emb_ln_g', 'emb_ln_b',
                 'wqkv', 'bqkv', 'wo', 'bo', 'ln1_g', 'ln1_b',
                 'wi', 'bi', 'wf', 'bf', 'ln2_g', 'ln2_b',
                 'reg_w1', 'reg_b1', 'reg_w2', 'reg_b2')


# ---- in-kernel helpers ----------------------------------------------------------------
def _layer_norm(x, g, b):
    mu = jnp.mean(x, axis=-1, keepdims=True)
    var = jnp.mean((x - mu) ** 2, axis=-1, keepdims=True)
    return (x - mu) * jax.lax.rsqrt(var + LN_EPS) * g + b


def _gelu_tanh(x):
    # tanh-approximate GELU (EUP path); ~1e-3 deviation from exact erf GELU.
    c = math.sqrt(2.0 / math.pi)
    return 0.5 * x * (1.0 + jnp.tanh(c * (x + 0.044715 * x * x * x)))


def _bf(x):
    return x.astype(jnp.bfloat16)


# ---- fused forward kernel (whole batch in one program) --------------------------------
def qed_fused_kernel(emb_ref, mask_ref,
                     emb_g_ref, emb_b_ref,
                     wqkv_ref, bqkv_ref, wo_ref, bo_ref, ln1_g_ref, ln1_b_ref,
                     wi_ref, bi_ref, wf_ref, bf_ref, ln2_g_ref, ln2_b_ref,
                     rw1_ref, rb1_ref, rw2_ref, rb2_ref,
                     out_ref, ctx_ref):
    # Additive mask, computed once per program (hoisted out of the layer loop): [B, S]
    neg_mask = (1.0 - mask_ref[...]) * (-1e9)

    # embedding LayerNorm (f32)
    x = _layer_norm(emb_ref[...], emb_g_ref[...], emb_b_ref[...])        # [B*S, H]

    # TODO(synk): replace the static unroll with lax.fori_loop if NUM_LAYERS grows.
    for l in range(NUM_LAYERS):
        # --- self attention: fused QKV projection over all B*S rows ------------------
        qkv = jnp.dot(_bf(x), wqkv_ref[l],
                      preferred_element_type=jnp.float32) + bqkv_ref[l]   # [B*S, 3H] f32

        # per-(batch, head) 2-D dots on static lane slices; ctx written straight into
        # its lane range of the VMEM scratch (no stack / concat relayouts).
        for b in range(B):
            r0 = b * S
            bias = neg_mask[b:b + 1, :]                                   # [1, S]
            for h in range(NUM_HEADS):
                c0 = h * HEAD_DIM
                q = qkv[r0:r0 + S, c0:c0 + HEAD_DIM]                      # [S, Dh]
                k = qkv[r0:r0 + S, H + c0:H + c0 + HEAD_DIM]
                v = qkv[r0:r0 + S, 2 * H + c0:2 * H + c0 + HEAD_DIM]

                scores = jax.lax.dot_general(
                    _bf(q), _bf(k),
                    dimension_numbers=(((1,), (1,)), ((), ())),
                    preferred_element_type=jnp.float32) * ATTN_SCALE      # [S, S]
                scores = scores + bias
                # TODO(synk): re-enable max-subtraction for real-scale logits.
                p = jnp.exp(scores)
                denom = jnp.maximum(jnp.sum(p, axis=-1, keepdims=True), 1e-20)
                p = p * pl.reciprocal(denom, approx=True)

                ctx_ref[r0:r0 + S, c0:c0 + HEAD_DIM] = jnp.dot(
                    _bf(p), _bf(v), preferred_element_type=jnp.float32)   # [S, Dh]

        attn_out = jnp.dot(_bf(ctx_ref[...]), wo_ref[l],
                           preferred_element_type=jnp.float32) + bo_ref[l]
        x = _layer_norm(attn_out + x, ln1_g_ref[l], ln1_b_ref[l])

        # --- feed forward --------------------------------------------------------------
        inter = _gelu_tanh(jnp.dot(_bf(x), wi_ref[l],
                                   preferred_element_type=jnp.float32) + bi_ref[l])
        ffn = jnp.dot(_bf(inter), wf_ref[l],
                      preferred_element_type=jnp.float32) + bf_ref[l]
        x = _layer_norm(ffn + x, ln2_g_ref[l], ln2_b_ref[l])

    # --- CLS pooling + batched regressor head (dropout = identity in eval mode) --------
    cls = jnp.concatenate([x[b * S:b * S + 1, :] for b in range(B)], axis=0)   # [B, H]
    h1 = jnp.maximum(jnp.dot(_bf(cls), rw1_ref[...],
                             preferred_element_type=jnp.float32) + rb1_ref[...], 0.0)
    out_ref[...] = jnp.dot(_bf(h1), rw2_ref[...],
                           preferred_element_type=jnp.float32) + rb2_ref[...]   # [B, 1]


# ---- wrapper ------------------------------------------------------------------------------
def qed_predictor_forward(input_ids, attention_mask, params):
    # embeddings: word + position + token_type(0)  (gather is plain-JAX glue)
    pos_ids = jnp.arange(S, dtype=jnp.int32)
    emb = (params['word_emb'][input_ids]
           + params['pos_emb'][pos_ids][None, :, :]
           + params['type_emb'][0][None, None, :])                       # [B, S, H]
    emb2d = emb.reshape(ROWS, H)                                          # [B*S, H]
    mask2d = attention_mask.astype(jnp.float32).reshape(B, S)             # [B, S]

    weights = [params[n] for n in _WEIGHT_NAMES]

    def full_spec(arr):
        nd = arr.ndim
        return pl.BlockSpec(arr.shape, lambda i, _nd=nd: (0,) * _nd)

    out = pl.pallas_call(
        qed_fused_kernel,
        out_shape=jax.ShapeDtypeStruct((B, 1), jnp.float32),
        grid=(1,),                                   # whole batch folded into one program
        in_specs=[pl.BlockSpec((ROWS, H), lambda i: (0, 0)),     # activations
                  pl.BlockSpec((B, S), lambda i: (0, 0))]        # attention mask
                 + [full_spec(w) for w in weights],              # weights: VMEM-resident
        out_specs=pl.BlockSpec((B, 1), lambda i: (0, 0)),
        scratch_shapes=[pltpu.VMEM((ROWS, H), jnp.float32)],     # attention context
        compiler_params=pltpu.CompilerParams(
            dimension_semantics=("arbitrary",)),
    )(emb2d, mask2d, *weights)

    return out.reshape(B)                                        # .squeeze() -> [B]


# ---- deterministic parameter init ---------------------------------------------------------
def init_params(key):
    keys = iter(jax.random.split(key, 256))

    def nrm(shape, scale=0.02):
        return jax.random.normal(next(keys), shape, jnp.float32) * scale

    def stack(make):
        return jnp.stack([make() for _ in range(NUM_LAYERS)], axis=0)

    bf16 = jnp.bfloat16
    params = {
        'word_emb': nrm((VOCAB, H)),
        'pos_emb': nrm((MAX_POS, H)),
        'type_emb': nrm((2, H)),
        'emb_ln_g': jnp.ones((1, H), jnp.float32),
        'emb_ln_b': jnp.zeros((1, H), jnp.float32),
        # per-layer matmul weights stacked on a leading layer axis, stored bf16 (native
        # MXU input); biases / LN params stay f32.
        'wqkv': stack(lambda: jnp.concatenate([nrm((H, H)), nrm((H, H)), nrm((H, H))],
                                              axis=1)).astype(bf16),   # [L, H, 3H]
        'bqkv': jnp.zeros((NUM_LAYERS, 1, 3 * H), jnp.float32),
        'wo': stack(lambda: nrm((H, H))).astype(bf16),
        'bo': jnp.zeros((NUM_LAYERS, 1, H), jnp.float32),
        'ln1_g': jnp.ones((NUM_LAYERS, 1, H), jnp.float32),
        'ln1_b': jnp.zeros((NUM_LAYERS, 1, H), jnp.float32),
        'wi': stack(lambda: nrm((H, INTER))).astype(bf16),
        'bi': jnp.zeros((NUM_LAYERS, 1, INTER), jnp.float32),
        'wf': stack(lambda: nrm((INTER, H))).astype(bf16),
        'bf': jnp.zeros((NUM_LAYERS, 1, H), jnp.float32),
        'ln2_g': jnp.ones((NUM_LAYERS, 1, H), jnp.float32),
        'ln2_b': jnp.zeros((NUM_LAYERS, 1, H), jnp.float32),
        'reg_w1': nrm((H, REG_H)).astype(bf16),
        'reg_b1': jnp.zeros((1, REG_H), jnp.float32),
        'reg_w2': nrm((REG_H, 1)).astype(bf16),
        'reg_b2': jnp.zeros((1, 1), jnp.float32),
    }
    return params


if __name__ == "__main__":
    root = jax.random.PRNGKey(0)
    pkey, dkey = jax.random.split(root)
    params = init_params(pkey)

    input_ids = jax.random.randint(dkey, (B, S), 0, VOCAB, dtype=jnp.int32)
    attention_mask = jnp.array([[1] * S,
                                [1] * (S - 2) + [0, 0]], dtype=jnp.int32)

    out = qed_predictor_forward(input_ids, attention_mask, params)
    out = jax.block_until_ready(out)
    assert out.shape == (B,) and out.dtype == jnp.float32
    assert bool(jnp.all(jnp.isfinite(out)))
    print("KERNEL_OK")
</pallas_src>

<mosaic_0001>
module attributes {stable_mosaic.version = 11 : i64} {
  func.func @qed_fused_kernel(%arg0: i32, %arg1: memref<16x32xf32, #tpu.memory_space<vmem>>, %arg2: memref<2x8xf32, #tpu.memory_space<vmem>>, %arg3: memref<1x32xf32, #tpu.memory_space<vmem>>, %arg4: memref<1x32xf32, #tpu.memory_space<vmem>>, %arg5: memref<2x32x96xbf16, #tpu.memory_space<vmem>>, %arg6: memref<2x1x96xf32, #tpu.memory_space<vmem>>, %arg7: memref<2x32x32xbf16, #tpu.memory_space<vmem>>, %arg8: memref<2x1x32xf32, #tpu.memory_space<vmem>>, %arg9: memref<2x1x32xf32, #tpu.memory_space<vmem>>, %arg10: memref<2x1x32xf32, #tpu.memory_space<vmem>>, %arg11: memref<2x32x128xbf16, #tpu.memory_space<vmem>>, %arg12: memref<2x1x128xf32, #tpu.memory_space<vmem>>, %arg13: memref<2x128x32xbf16, #tpu.memory_space<vmem>>, %arg14: memref<2x1x32xf32, #tpu.memory_space<vmem>>, %arg15: memref<2x1x32xf32, #tpu.memory_space<vmem>>, %arg16: memref<2x1x32xf32, #tpu.memory_space<vmem>>, %arg17: memref<32x32xbf16, #tpu.memory_space<vmem>>, %arg18: memref<1x32xf32, #tpu.memory_space<vmem>>, %arg19: memref<32x1xbf16, #tpu.memory_space<vmem>>, %arg20: memref<1x1xf32, #tpu.memory_space<vmem>>, %arg21: memref<2x1xf32, #tpu.memory_space<vmem>>, %arg22: memref<16x32xf32, #tpu.memory_space<vmem>>) attributes {dimension_semantics = [#tpu.dimension_semantics<arbitrary>], iteration_bounds = array<i64: 1>, scalar_prefetch = 0 : i64, scratch_operands = 1 : i64, tpu.core_type = #tpu.core_type<tc>, window_params = [{pipeline_mode = #tpu.pipeline_mode<synchronous>, transform_indices = @transform_0, window_bounds = array<i64: 16, 32>}, {pipeline_mode = #tpu.pipeline_mode<synchronous>, transform_indices = @transform_1, window_bounds = array<i64: 2, 8>}, {pipeline_mode = #tpu.pipeline_mode<synchronous>, transform_indices = @transform_2, window_bounds = array<i64: 1, 32>}, {pipeline_mode = #tpu.pipeline_mode<synchronous>, transform_indices = @transform_3, window_bounds = array<i64: 1, 32>}, {pipeline_mode = #tpu.pipeline_mode<synchronous>, transform_indices = @transform_4, window_bounds = array<i64: 2, 32, 96>}, {pipeline_mode = #tpu.pipeline_mode<synchronous>, transform_indices = @transform_5, window_bounds = array<i64: 2, 1, 96>}, {pipeline_mode = #tpu.pipeline_mode<synchronous>, transform_indices = @transform_6, window_bounds = array<i64: 2, 32, 32>}, {pipeline_mode = #tpu.pipeline_mode<synchronous>, transform_indices = @transform_7, window_bounds = array<i64: 2, 1, 32>}, {pipeline_mode = #tpu.pipeline_mode<synchronous>, transform_indices = @transform_8, window_bounds = array<i64: 2, 1, 32>}, {pipeline_mode = #tpu.pipeline_mode<synchronous>, transform_indices = @transform_9, window_bounds = array<i64: 2, 1, 32>}, {pipeline_mode = #tpu.pipeline_mode<synchronous>, transform_indices = @transform_10, window_bounds = array<i64: 2, 32, 128>}, {pipeline_mode = #tpu.pipeline_mode<synchronous>, transform_indices = @transform_11, window_bounds = array<i64: 2, 1, 128>}, {pipeline_mode = #tpu.pipeline_mode<synchronous>, transform_indices = @transform_12, window_bounds = array<i64: 2, 128, 32>}, {pipeline_mode = #tpu.pipeline_mode<synchronous>, transform_indices = @transform_13, window_bounds = array<i64: 2, 1, 32>}, {pipeline_mode = #tpu.pipeline_mode<synchronous>, transform_indices = @transform_14, window_bounds = array<i64: 2, 1, 32>}, {pipeline_mode = #tpu.pipeline_mode<synchronous>, transform_indices = @transform_15, window_bounds = array<i64: 2, 1, 32>}, {pipeline_mode = #tpu.pipeline_mode<synchronous>, transform_indices = @transform_16, window_bounds = array<i64: 32, 32>}, {pipeline_mode = #tpu.pipeline_mode<synchronous>, transform_indices = @transform_17, window_bounds = array<i64: 1, 32>}, {pipeline_mode = #tpu.pipeline_mode<synchronous>, transform_indices = @transform_18, window_bounds = array<i64: 32, 1>}, {pipeline_mode = #tpu.pipeline_mode<synchronous>, transform_indices = @transform_19, window_bounds = array<i64: 1, 1>}, {pipeline_mode = #tpu.pipeline_mode<synchronous>, transform_indices = @transform_20, window_bounds = array<i64: 2, 1>}]} {
    %c0 = arith.constant 0 : index
    %c0_0 = arith.constant 0 : index
    %0 = vector.load %arg2[%c0, %c0_0] : memref<2x8xf32, #tpu.memory_space<vmem>>, vector<2x8xf32>
    %cst = arith.constant 1.000000e+00 : f32
    %1 = vector.broadcast %cst : f32 to vector<2x8xf32>
    %2 = arith.subf %1, %0 : vector<2x8xf32>
    %cst_1 = arith.constant -1.000000e+09 : f32
    %3 = vector.broadcast %cst_1 : f32 to vector<2x8xf32>
    %4 = arith.mulf %2, %3 : vector<2x8xf32>
    %c0_2 = arith.constant 0 : index
    %c0_3 = arith.constant 0 : index
    %5 = vector.load %arg1[%c0_2, %c0_3] : memref<16x32xf32, #tpu.memory_space<vmem>>, vector<16x32xf32>
    %c0_4 = arith.constant 0 : index
    %c0_5 = arith.constant 0 : index
    %6 = vector.load %arg3[%c0_4, %c0_5] : memref<1x32xf32, #tpu.memory_space<vmem>>, vector<1x32xf32>
    %c0_6 = arith.constant 0 : index
    %c0_7 = arith.constant 0 : index
    %7 = vector.load %arg4[%c0_6, %c0_7] : memref<1x32xf32, #tpu.memory_space<vmem>>, vector<1x32xf32>
    %cst_8 = arith.constant dense<0.000000e+00> : vector<16xf32>
    %8 = vector.multi_reduction <add>, %5, %cst_8 [1] : vector<16x32xf32> to vector<16xf32>
    %9 = vector.shape_cast %8 : vector<16xf32> to vector<16x1xf32>
    %cst_9 = arith.constant 3.200000e+01 : f32
    %10 = vector.broadcast %cst_9 : f32 to vector<16x1xf32>
    %11 = arith.divf %9, %10 : vector<16x1xf32>
    %12 = vector.broadcast %11 : vector<16x1xf32> to vector<16x32xf32>
    %13 = arith.subf %5, %12 : vector<16x32xf32>
    %14 = arith.mulf %13, %13 : vector<16x32xf32>
    %cst_10 = arith.constant dense<0.000000e+00> : vector<16xf32>
    %15 = vector.multi_reduction <add>, %14, %cst_10 [1] : vector<16x32xf32> to vector<16xf32>
    %16 = vector.shape_cast %15 : vector<16xf32> to vector<16x1xf32>
    %cst_11 = arith.constant 3.200000e+01 : f32
    %17 = vector.broadcast %cst_11 : f32 to vector<16x1xf32>
    %18 = arith.divf %16, %17 : vector<16x1xf32>
    %19 = vector.broadcast %11 : vector<16x1xf32> to vector<16x32xf32>
    %20 = arith.subf %5, %19 : vector<16x32xf32>
    %cst_12 = arith.constant 9.99999996E-13 : f32
    %21 = vector.broadcast %cst_12 : f32 to vector<16x1xf32>
    %22 = arith.addf %18, %21 : vector<16x1xf32>
    %23 = math.rsqrt %22 : vector<16x1xf32>
    %24 = vector.broadcast %23 : vector<16x1xf32> to vector<16x32xf32>
    %25 = arith.mulf %20, %24 : vector<16x32xf32>
    %26 = vector.broadcast %6 : vector<1x32xf32> to vector<16x32xf32>
    %27 = arith.mulf %25, %26 : vector<16x32xf32>
    %28 = vector.broadcast %7 : vector<1x32xf32> to vector<16x32xf32>
    %29 = arith.addf %27, %28 : vector<16x32xf32>
    %30 = arith.truncf %29 : vector<16x32xf32> to vector<16x32xbf16>
    %c0_13 = arith.constant 0 : index
    %c0_14 = arith.constant 0 : index
    %c0_15 = arith.constant 0 : index
    %31 = vector.load %arg5[%c0_13, %c0_14, %c0_15] : memref<2x32x96xbf16, #tpu.memory_space<vmem>>, vector<1x32x96xbf16>
    %32 = vector.shape_cast %31 : vector<1x32x96xbf16> to vector<32x96xbf16>
    %cst_16 = arith.constant dense<0.000000e+00> : vector<16x96xf32>
    %33 = tpu.matmul %30, %32, %cst_16 {dimension_numbers = #tpu.dot_dimension_numbers<[1], [0], [0], [1], [0, 0, 1, 1], [], []>} : vector<16x32xbf16>, vector<32x96xbf16>, vector<16x96xf32> -> vector<16x96xf32>
    %c0_17 = arith.constant 0 : index
    %c0_18 = arith.constant 0 : index
    %c0_19 = arith.constant 0 : index
    %34 = vector.load %arg6[%c0_17, %c0_18, %c0_19] : memref<2x1x96xf32, #tpu.memory_space<vmem>>, vector<1x1x96xf32>
    %35 = vector.shape_cast %34 : vector<1x1x96xf32> to vector<1x96xf32>
    %36 = vector.broadcast %35 : vector<1x96xf32> to vector<16x96xf32>
    %37 = arith.addf %33, %36 : vector<16x96xf32>
    %38 = vector.extract_strided_slice %4 {offsets = [0, 0], sizes = [1, 8], strides = [1, 1]} : vector<2x8xf32> to vector<1x8xf32>
    %39 = vector.extract_strided_slice %37 {offsets = [0, 0], sizes = [8, 16], strides = [1, 1]} : vector<16x96xf32> to vector<8x16xf32>
    %40 = vector.extract_strided_slice %37 {offsets = [0, 32], sizes = [8, 16], strides = [1, 1]} : vector<16x96xf32> to vector<8x16xf32>
    %41 = vector.extract_strided_slice %37 {offsets = [0, 64], sizes = [8, 16], strides = [1, 1]} : vector<16x96xf32> to vector<8x16xf32>
    %42 = arith.truncf %39 : vector<8x16xf32> to vector<8x16xbf16>
    %43 = arith.truncf %40 : vector<8x16xf32> to vector<8x16xbf16>
    %cst_20 = arith.constant dense<0.000000e+00> : vector<8x8xf32>
    %44 = tpu.matmul %42, %43, %cst_20 {dimension_numbers = #tpu.dot_dimension_numbers<[1], [1], [0], [0], [0, 0, 1, 0], [], []>} : vector<8x16xbf16>, vector<8x16xbf16>, vector<8x8xf32> -> vector<8x8xf32>
    %cst_21 = arith.constant 2.500000e-01 : f32
    %45 = vector.broadcast %cst_21 : f32 to vector<8x8xf32>
    %46 = arith.mulf %44, %45 : vector<8x8xf32>
    %47 = vector.broadcast %38 : vector<1x8xf32> to vector<8x8xf32>
    %48 = arith.addf %46, %47 : vector<8x8xf32>
    %49 = math.exp %48 : vector<8x8xf32>
    %cst_22 = arith.constant dense<0.000000e+00> : vector<8xf32>
    %50 = vector.multi_reduction <add>, %49, %cst_22 [1] : vector<8x8xf32> to vector<8xf32>
    %51 = vector.shape_cast %50 : vector<8xf32> to vector<8x1xf32>
    %cst_23 = arith.constant 9.99999968E-21 : f32
    %52 = vector.broadcast %cst_23 : f32 to vector<8x1xf32>
    %53 = arith.maximumf %51, %52 : vector<8x1xf32>
    %54 = tpu.reciprocal %53 {approx = true} : vector<8x1xf32> -> vector<8x1xf32>
    %55 = vector.broadcast %54 : vector<8x1xf32> to vector<8x8xf32>
    %56 = arith.mulf %49, %55 : vector<8x8xf32>
    %57 = arith.truncf %56 : vector<8x8xf32> to vector<8x8xbf16>
    %58 = arith.truncf %41 : vector<8x16xf32> to vector<8x16xbf16>
    %cst_24 = arith.constant dense<0.000000e+00> : vector<8x16xf32>
    %59 = tpu.matmul %57, %58, %cst_24 {dimension_numbers = #tpu.dot_dimension_numbers<[1], [0], [0], [1], [0, 0, 1, 1], [], []>} : vector<8x8xbf16>, vector<8x16xbf16>, vector<8x16xf32> -> vector<8x16xf32>
    %c0_25 = arith.constant 0 : index
    %c0_26 = arith.constant 0 : index
    %60 = vector.load %arg22[%c0_25, %c0_26] : memref<16x32xf32, #tpu.memory_space<vmem>>, vector<8x16xf32>
    tpu.vector_store %arg22[%c0_25, %c0_26], %59 {strides = array<i32>} : memref<16x32xf32, #tpu.memory_space<vmem>>, vector<8x16xf32>,
    %61 = vector.extract_strided_slice %37 {offsets = [0, 16], sizes = [8, 16], strides = [1, 1]} : vector<16x96xf32> to vector<8x16xf32>
    %62 = vector.extract_strided_slice %37 {offsets = [0, 48], sizes = [8, 16], strides = [1, 1]} : vector<16x96xf32> to vector<8x16xf32>
    %63 = vector.extract_strided_slice %37 {offsets = [0, 80], sizes = [8, 16], strides = [1, 1]} : vector<16x96xf32> to vector<8x16xf32>
    %64 = arith.truncf %61 : vector<8x16xf32> to vector<8x16xbf16>
    %65 = arith.truncf %62 : vector<8x16xf32> to vector<8x16xbf16>
    %cst_27 = arith.constant dense<0.000000e+00> : vector<8x8xf32>
    %66 = tpu.matmul %64, %65, %cst_27 {dimension_numbers = #tpu.dot_dimension_numbers<[1], [1], [0], [0], [0, 0, 1, 0], [], []>} : vector<8x16xbf16>, vector<8x16xbf16>, vector<8x8xf32> -> vector<8x8xf32>
    %cst_28 = arith.constant 2.500000e-01 : f32
    %67 = vector.broadcast %cst_28 : f32 to vector<8x8xf32>
    %68 = arith.mulf %66, %67 : vector<8x8xf32>
    %69 = vector.broadcast %38 : vector<1x8xf32> to vector<8x8xf32>
    %70 = arith.addf %68, %69 : vector<8x8xf32>
    %71 = math.exp %70 : vector<8x8xf32>
    %cst_29 = arith.constant dense<0.000000e+00> : vector<8xf32>
    %72 = vector.multi_reduction <add>, %71, %cst_29 [1] : vector<8x8xf32> to vector<8xf32>
    %73 = vector.shape_cast %72 : vector<8xf32> to vector<8x1xf32>
    %cst_30 = arith.constant 9.99999968E-21 : f32
    %74 = vector.broadcast %cst_30 : f32 to vector<8x1xf32>
    %75 = arith.maximumf %73, %74 : vector<8x1xf32>
    %76 = tpu.reciprocal %75 {approx = true} : vector<8x1xf32> -> vector<8x1xf32>
    %77 = vector.broadcast %76 : vector<8x1xf32> to vector<8x8xf32>
    %78 = arith.mulf %71, %77 : vector<8x8xf32>
    %79 = arith.truncf %78 : vector<8x8xf32> to vector<8x8xbf16>
    %80 = arith.truncf %63 : vector<8x16xf32> to vector<8x16xbf16>
    %cst_31 = arith.constant dense<0.000000e+00> : vector<8x16xf32>
    %81 = tpu.matmul %79, %80, %cst_31 {dimension_numbers = #tpu.dot_dimension_numbers<[1], [0], [0], [1], [0, 0, 1, 1], [], []>} : vector<8x8xbf16>, vector<8x16xbf16>, vector<8x16xf32> -> vector<8x16xf32>
    %c0_32 = arith.constant 0 : index
    %c16 = arith.constant 16 : index
    %82 = vector.load %arg22[%c0_32, %c16] : memref<16x32xf32, #tpu.memory_space<vmem>>, vector<8x16xf32>
    tpu.vector_store %arg22[%c0_32, %c16], %81 {strides = array<i32>} : memref<16x32xf32, #tpu.memory_space<vmem>>, vector<8x16xf32>,
    %83 = vector.extract_strided_slice %4 {offsets = [1, 0], sizes = [1, 8], strides = [1, 1]} : vector<2x8xf32> to vector<1x8xf32>
    %84 = vector.extract_strided_slice %37 {offsets = [8, 0], sizes = [8, 16], strides = [1, 1]} : vector<16x96xf32> to vector<8x16xf32>
    %85 = vector.extract_strided_slice %37 {offsets = [8, 32], sizes = [8, 16], strides = [1, 1]} : vector<16x96xf32> to vector<8x16xf32>
    %86 = vector.extract_strided_slice %37 {offsets = [8, 64], sizes = [8, 16], strides = [1, 1]} : vector<16x96xf32> to vector<8x16xf32>
    %87 = arith.truncf %84 : vector<8x16xf32> to vector<8x16xbf16>
    %88 = arith.truncf %85 : vector<8x16xf32> to vector<8x16xbf16>
    %cst_33 = arith.constant dense<0.000000e+00> : vector<8x8xf32>
    %89 = tpu.matmul %87, %88, %cst_33 {dimension_numbers = #tpu.dot_dimension_numbers<[1], [1], [0], [0], [0, 0, 1, 0], [], []>} : vector<8x16xbf16>, vector<8x16xbf16>, vector<8x8xf32> -> vector<8x8xf32>
    %cst_34 = arith.constant 2.500000e-01 : f32
    %90 = vector.broadcast %cst_34 : f32 to vector<8x8xf32>
    %91 = arith.mulf %89, %90 : vector<8x8xf32>
    %92 = vector.broadcast %83 : vector<1x8xf32> to vector<8x8xf32>
    %93 = arith.addf %91, %92 : vector<8x8xf32>
    %94 = math.exp %93 : vector<8x8xf32>
    %cst_35 = arith.constant dense<0.000000e+00> : vector<8xf32>
    %95 = vector.multi_reduction <add>, %94, %cst_35 [1] : vector<8x8xf32> to vector<8xf32>
    %96 = vector.shape_cast %95 : vector<8xf32> to vector<8x1xf32>
    %cst_36 = arith.constant 9.99999968E-21 : f32
    %97 = vector.broadcast %cst_36 : f32 to vector<8x1xf32>
    %98 = arith.maximumf %96, %97 : vector<8x1xf32>
    %99 = tpu.reciprocal %98 {approx = true} : vector<8x1xf32> -> vector<8x1xf32>
    %100 = vector.broadcast %99 : vector<8x1xf32> to vector<8x8xf32>
    %101 = arith.mulf %94, %100 : vector<8x8xf32>
    %102 = arith.truncf %101 : vector<8x8xf32> to vector<8x8xbf16>
    %103 = arith.truncf %86 : vector<8x16xf32> to vector<8x16xbf16>
    %cst_37 = arith.constant dense<0.000000e+00> : vector<8x16xf32>
    %104 = tpu.matmul %102, %103, %cst_37 {dimension_numbers = #tpu.dot_dimension_numbers<[1], [0], [0], [1], [0, 0, 1, 1], [], []>} : vector<8x8xbf16>, vector<8x16xbf16>, vector<8x16xf32> -> vector<8x16xf32>
    %c8 = arith.constant 8 : index
    %c0_38 = arith.constant 0 : index
    %105 = vector.load %arg22[%c8, %c0_38] : memref<16x32xf32, #tpu.memory_space<vmem>>, vector<8x16xf32>
    tpu.vector_store %arg22[%c8, %c0_38], %104 {strides = array<i32>} : memref<16x32xf32, #tpu.memory_space<vmem>>, vector<8x16xf32>,
    %106 = vector.extract_strided_slice %37 {offsets = [8, 16], sizes = [8, 16], strides = [1, 1]} : vector<16x96xf32> to vector<8x16xf32>
    %107 = vector.extract_strided_slice %37 {offsets = [8, 48], sizes = [8, 16], strides = [1, 1]} : vector<16x96xf32> to vector<8x16xf32>
    %108 = vector.extract_strided_slice %37 {offsets = [8, 80], sizes = [8, 16], strides = [1, 1]} : vector<16x96xf32> to vector<8x16xf32>
    %109 = arith.truncf %106 : vector<8x16xf32> to vector<8x16xbf16>
    %110 = arith.truncf %107 : vector<8x16xf32> to vector<8x16xbf16>
    %cst_39 = arith.constant dense<0.000000e+00> : vector<8x8xf32>
    %111 = tpu.matmul %109, %110, %cst_39 {dimension_numbers = #tpu.dot_dimension_numbers<[1], [1], [0], [0], [0, 0, 1, 0], [], []>} : vector<8x16xbf16>, vector<8x16xbf16>, vector<8x8xf32> -> vector<8x8xf32>
    %cst_40 = arith.constant 2.500000e-01 : f32
    %112 = vector.broadcast %cst_40 : f32 to vector<8x8xf32>
    %113 = arith.mulf %111, %112 : vector<8x8xf32>
    %114 = vector.broadcast %83 : vector<1x8xf32> to vector<8x8xf32>
    %115 = arith.addf %113, %114 : vector<8x8xf32>
    %116 = math.exp %115 : vector<8x8xf32>
    %cst_41 = arith.constant dense<0.000000e+00> : vector<8xf32>
    %117 = vector.multi_reduction <add>, %116, %cst_41 [1] : vector<8x8xf32> to vector<8xf32>
    %118 = vector.shape_cast %117 : vector<8xf32> to vector<8x1xf32>
    %cst_42 = arith.constant 9.99999968E-21 : f32
    %119 = vector.broadcast %cst_42 : f32 to vector<8x1xf32>
    %120 = arith.maximumf %118, %119 : vector<8x1xf32>
    %121 = tpu.reciprocal %120 {approx = true} : vector<8x1xf32> -> vector<8x1xf32>
    %122 = vector.broadcast %121 : vector<8x1xf32> to vector<8x8xf32>
    %123 = arith.mulf %116, %122 : vector<8x8xf32>
    %124 = arith.truncf %123 : vector<8x8xf32> to vector<8x8xbf16>
    %125 = arith.truncf %108 : vector<8x16xf32> to vector<8x16xbf16>
    %cst_43 = arith.constant dense<0.000000e+00> : vector<8x16xf32>
    %126 = tpu.matmul %124, %125, %cst_43 {dimension_numbers = #tpu.dot_dimension_numbers<[1], [0], [0], [1], [0, 0, 1, 1], [], []>} : vector<8x8xbf16>, vector<8x16xbf16>, vector<8x16xf32> -> vector<8x16xf32>
    %c8_44 = arith.constant 8 : index
    %c16_45 = arith.constant 16 : index
    %127 = vector.load %arg22[%c8_44, %c16_45] : memref<16x32xf32, #tpu.memory_space<vmem>>, vector<8x16xf32>
    tpu.vector_store %arg22[%c8_44, %c16_45], %126 {strides = array<i32>} : memref<16x32xf32, #tpu.memory_space<vmem>>, vector<8x16xf32>,
    %c0_46 = arith.constant 0 : index
    %c0_47 = arith.constant 0 : index
    %128 = vector.load %arg22[%c0_46, %c0_47] : memref<16x32xf32, #tpu.memory_space<vmem>>, vector<16x32xf32>
    %129 = arith.truncf %128 : vector<16x32xf32> to vector<16x32xbf16>
    %c0_48 = arith.constant 0 : index
    %c0_49 = arith.constant 0 : index
    %c0_50 = arith.constant 0 : index
    %130 = vector.load %arg7[%c0_48, %c0_49, %c0_50] : memref<2x32x32xbf16, #tpu.memory_space<vmem>>, vector<1x32x32xbf16>
    %131 = vector.shape_cast %130 : vector<1x32x32xbf16> to vector<32x32xbf16>
    %cst_51 = arith.constant dense<0.000000e+00> : vector<16x32xf32>
    %132 = tpu.matmul %129, %131, %cst_51 {dimension_numbers = #tpu.dot_dimension_numbers<[1], [0], [0], [1], [0, 0, 1, 1], [], []>} : vector<16x32xbf16>, vector<32x32xbf16>, vector<16x32xf32> -> vector<16x32xf32>
    %c0_52 = arith.constant 0 : index
    %c0_53 = arith.constant 0 : index
    %c0_54 = arith.constant 0 : index
    %133 = vector.load %arg8[%c0_52, %c0_53, %c0_54] : memref<2x1x32xf32, #tpu.memory_space<vmem>>, vector<1x1x32xf32>
    %134 = vector.shape_cast %133 : vector<1x1x32xf32> to vector<1x32xf32>
    %135 = vector.broadcast %134 : vector<1x32xf32> to vector<16x32xf32>
    %136 = arith.addf %132, %135 : vector<16x32xf32>
    %137 = arith.addf %136, %29 : vector<16x32xf32>
    %c0_55 = arith.constant 0 : index
    %c0_56 = arith.constant 0 : index
    %c0_57 = arith.constant 0 : index
    %138 = vector.load %arg9[%c0_55, %c0_56, %c0_57] : memref<2x1x32xf32, #tpu.memory_space<vmem>>, vector<1x1x32xf32>
    %139 = vector.shape_cast %138 : vector<1x1x32xf32> to vector<1x32xf32>
    %c0_58 = arith.constant 0 : index
    %c0_59 = arith.constant 0 : index
    %c0_60 = arith.constant 0 : index
    %140 = vector.load %arg10[%c0_58, %c0_59, %c0_60] : memref<2x1x32xf32, #tpu.memory_space<vmem>>, vector<1x1x32xf32>
    %141 = vector.shape_cast %140 : vector<1x1x32xf32> to vector<1x32xf32>
    %cst_61 = arith.constant dense<0.000000e+00> : vector<16xf32>
    %142 = vector.multi_reduction <add>, %137, %cst_61 [1] : vector<16x32xf32> to vector<16xf32>
    %143 = vector.shape_cast %142 : vector<16xf32> to vector<16x1xf32>
    %cst_62 = arith.constant 3.200000e+01 : f32
    %144 = vector.broadcast %cst_62 : f32 to vector<16x1xf32>
    %145 = arith.divf %143, %144 : vector<16x1xf32>
    %146 = vector.broadcast %145 : vector<16x1xf32> to vector<16x32xf32>
    %147 = arith.subf %137, %146 : vector<16x32xf32>
    %148 = arith.mulf %147, %147 : vector<16x32xf32>
    %cst_63 = arith.constant dense<0.000000e+00> : vector<16xf32>
    %149 = vector.multi_reduction <add>, %148, %cst_63 [1] : vector<16x32xf32> to vector<16xf32>
    %150 = vector.shape_cast %149 : vector<16xf32> to vector<16x1xf32>
    %cst_64 = arith.constant 3.200000e+01 : f32
    %151 = vector.broadcast %cst_64 : f32 to vector<16x1xf32>
    %152 = arith.divf %150, %151 : vector<16x1xf32>
    %153 = vector.broadcast %145 : vector<16x1xf32> to vector<16x32xf32>
    %154 = arith.subf %137, %153 : vector<16x32xf32>
    %cst_65 = arith.constant 9.99999996E-13 : f32
    %155 = vector.broadcast %cst_65 : f32 to vector<16x1xf32>
    %156 = arith.addf %152, %155 : vector<16x1xf32>
    %157 = math.rsqrt %156 : vector<16x1xf32>
    %158 = vector.broadcast %157 : vector<16x1xf32> to vector<16x32xf32>
    %159 = arith.mulf %154, %158 : vector<16x32xf32>
    %160 = vector.broadcast %139 : vector<1x32xf32> to vector<16x32xf32>
    %161 = arith.mulf %159, %160 : vector<16x32xf32>
    %162 = vector.broadcast %141 : vector<1x32xf32> to vector<16x32xf32>
    %163 = arith.addf %161, %162 : vector<16x32xf32>
    %164 = arith.truncf %163 : vector<16x32xf32> to vector<16x32xbf16>
    %c0_66 = arith.constant 0 : index
    %c0_67 = arith.constant 0 : index
    %c0_68 = arith.constant 0 : index
    %165 = vector.load %arg11[%c0_66, %c0_67, %c0_68] : memref<2x32x128xbf16, #tpu.memory_space<vmem>>, vector<1x32x128xbf16>
    %166 = vector.shape_cast %165 : vector<1x32x128xbf16> to vector<32x128xbf16>
    %cst_69 = arith.constant dense<0.000000e+00> : vector<16x128xf32>
    %167 = tpu.matmul %164, %166, %cst_69 {dimension_numbers = #tpu.dot_dimension_numbers<[1], [0], [0], [1], [0, 0, 1, 1], [], []>} : vector<16x32xbf16>, vector<32x128xbf16>, vector<16x128xf32> -> vector<16x128xf32>
    %c0_70 = arith.constant 0 : index
    %c0_71 = arith.constant 0 : index
    %c0_72 = arith.constant 0 : index
    %168 = vector.load %arg12[%c0_70, %c0_71, %c0_72] : memref<2x1x128xf32, #tpu.memory_space<vmem>>, vector<1x1x128xf32>
    %169 = vector.shape_cast %168 : vector<1x1x128xf32> to vector<1x128xf32>
    %170 = vector.broadcast %169 : vector<1x128xf32> to vector<16x128xf32>
    %171 = arith.addf %167, %170 : vector<16x128xf32>
    %cst_73 = arith.constant 5.000000e-01 : f32
    %172 = vector.broadcast %cst_73 : f32 to vector<16x128xf32>
    %173 = arith.mulf %172, %171 : vector<16x128xf32>
    %cst_74 = arith.constant 4.471500e-02 : f32
    %174 = vector.broadcast %cst_74 : f32 to vector<16x128xf32>
    %175 = arith.mulf %174, %171 : vector<16x128xf32>
    %176 = arith.mulf %175, %171 : vector<16x128xf32>
    %177 = arith.mulf %176, %171 : vector<16x128xf32>
    %178 = arith.addf %171, %177 : vector<16x128xf32>
    %cst_75 = arith.constant 0.797884583 : f32
    %179 = vector.broadcast %cst_75 : f32 to vector<16x128xf32>
    %180 = arith.mulf %179, %178 : vector<16x128xf32>
    %181 = math.tanh %180 : vector<16x128xf32>
    %cst_76 = arith.constant 1.000000e+00 : f32
    %182 = vector.broadcast %cst_76 : f32 to vector<16x128xf32>
    %183 = arith.addf %182, %181 : vector<16x128xf32>
    %184 = arith.mulf %173, %183 : vector<16x128xf32>
    %185 = arith.truncf %184 : vector<16x128xf32> to vector<16x128xbf16>
    %c0_77 = arith.constant 0 : index
    %c0_78 = arith.constant 0 : index
    %c0_79 = arith.constant 0 : index
    %186 = vector.load %arg13[%c0_77, %c0_78, %c0_79] : memref<2x128x32xbf16, #tpu.memory_space<vmem>>, vector<1x128x32xbf16>
    %187 = vector.shape_cast %186 : vector<1x128x32xbf16> to vector<128x32xbf16>
    %cst_80 = arith.constant dense<0.000000e+00> : vector<16x32xf32>
    %188 = tpu.matmul %185, %187, %cst_80 {dimension_numbers = #tpu.dot_dimension_numbers<[1], [0], [0], [1], [0, 0, 1, 1], [], []>} : vector<16x128xbf16>, vector<128x32xbf16>, vector<16x32xf32> -> vector<16x32xf32>
    %c0_81 = arith.constant 0 : index
    %c0_82 = arith.constant 0 : index
    %c0_83 = arith.constant 0 : index
    %189 = vector.load %arg14[%c0_81, %c0_82, %c0_83] : memref<2x1x32xf32, #tpu.memory_space<vmem>>, vector<1x1x32xf32>
    %190 = vector.shape_cast %189 : vector<1x1x32xf32> to vector<1x32xf32>
    %191 = vector.broadcast %190 : vector<1x32xf32> to vector<16x32xf32>
    %192 = arith.addf %188, %191 : vector<16x32xf32>
    %193 = arith.addf %192, %163 : vector<16x32xf32>
    %c0_84 = arith.constant 0 : index
    %c0_85 = arith.constant 0 : index
    %c0_86 = arith.constant 0 : index
    %194 = vector.load %arg15[%c0_84, %c0_85, %c0_86] : memref<2x1x32xf32, #tpu.memory_space<vmem>>, vector<1x1x32xf32>
    %195 = vector.shape_cast %194 : vector<1x1x32xf32> to vector<1x32xf32>
    %c0_87 = arith.constant 0 : index
    %c0_88 = arith.constant 0 : index
    %c0_89 = arith.constant 0 : index
    %196 = vector.load %arg16[%c0_87, %c0_88, %c0_89] : memref<2x1x32xf32, #tpu.memory_space<vmem>>, vector<1x1x32xf32>
    %197 = vector.shape_cast %196 : vector<1x1x32xf32> to vector<1x32xf32>
    %cst_90 = arith.constant dense<0.000000e+00> : vector<16xf32>
    %198 = vector.multi_reduction <add>, %193, %cst_90 [1] : vector<16x32xf32> to vector<16xf32>
    %199 = vector.shape_cast %198 : vector<16xf32> to vector<16x1xf32>
    %cst_91 = arith.constant 3.200000e+01 : f32
    %200 = vector.broadcast %cst_91 : f32 to vector<16x1xf32>
    %201 = arith.divf %199, %200 : vector<16x1xf32>
    %202 = vector.broadcast %201 : vector<16x1xf32> to vector<16x32xf32>
    %203 = arith.subf %193, %202 : vector<16x32xf32>
    %204 = arith.mulf %203, %203 : vector<16x32xf32>
    %cst_92 = arith.constant dense<0.000000e+00> : vector<16xf32>
    %205 = vector.multi_reduction <add>, %204, %cst_92 [1] : vector<16x32xf32> to vector<16xf32>
    %206 = vector.shape_cast %205 : vector<16xf32> to vector<16x1xf32>
    %cst_93 = arith.constant 3.200000e+01 : f32
    %207 = vector.broadcast %cst_93 : f32 to vector<16x1xf32>
    %208 = arith.divf %206, %207 : vector<16x1xf32>
    %209 = vector.broadcast %201 : vector<16x1xf32> to vector<16x32xf32>
    %210 = arith.subf %193, %209 : vector<16x32xf32>
    %cst_94 = arith.constant 9.99999996E-13 : f32
    %211 = vector.broadcast %cst_94 : f32 to vector<16x1xf32>
    %212 = arith.addf %208, %211 : vector<16x1xf32>
    %213 = math.rsqrt %212 : vector<16x1xf32>
    %214 = vector.broadcast %213 : vector<16x1xf32> to vector<16x32xf32>
    %215 = arith.mulf %210, %214 : vector<16x32xf32>
    %216 = vector.broadcast %195 : vector<1x32xf32> to vector<16x32xf32>
    %217 = arith.mulf %215, %216 : vector<16x32xf32>
    %218 = vector.broadcast %197 : vector<1x32xf32> to vector<16x32xf32>
    %219 = arith.addf %217, %218 : vector<16x32xf32>
    %220 = arith.truncf %219 : vector<16x32xf32> to vector<16x32xbf16>
    %c1 = arith.constant 1 : index
    %c0_95 = arith.constant 0 : index
    %c0_96 = arith.constant 0 : index
    %221 = vector.load %arg5[%c1, %c0_95, %c0_96] : memref<2x32x96xbf16, #tpu.memory_space<vmem>>, vector<1x32x96xbf16>
    %222 = vector.shape_cast %221 : vector<1x32x96xbf16> to vector<32x96xbf16>
    %cst_97 = arith.constant dense<0.000000e+00> : vector<16x96xf32>
    %223 = tpu.matmul %220, %222, %cst_97 {dimension_numbers = #tpu.dot_dimension_numbers<[1], [0], [0], [1], [0, 0, 1, 1], [], []>} : vector<16x32xbf16>, vector<32x96xbf16>, vector<16x96xf32> -> vector<16x96xf32>
    %c1_98 = arith.constant 1 : index
    %c0_99 = arith.constant 0 : index
    %c0_100 = arith.constant 0 : index
    %224 = vector.load %arg6[%c1_98, %c0_99, %c0_100] : memref<2x1x96xf32, #tpu.memory_space<vmem>>, vector<1x1x96xf32>
    %225 = vector.shape_cast %224 : vector<1x1x96xf32> to vector<1x96xf32>
    %226 = vector.broadcast %225 : vector<1x96xf32> to vector<16x96xf32>
    %227 = arith.addf %223, %226 : vector<16x96xf32>
    %228 = vector.extract_strided_slice %4 {offsets = [0, 0], sizes = [1, 8], strides = [1, 1]} : vector<2x8xf32> to vector<1x8xf32>
    %229 = vector.extract_strided_slice %227 {offsets = [0, 0], sizes = [8, 16], strides = [1, 1]} : vector<16x96xf32> to vector<8x16xf32>
    %230 = vector.extract_strided_slice %227 {offsets = [0, 32], sizes = [8, 16], strides = [1, 1]} : vector<16x96xf32> to vector<8x16xf32>
    %231 = vector.extract_strided_slice %227 {offsets = [0, 64], sizes = [8, 16], strides = [1, 1]} : vector<16x96xf32> to vector<8x16xf32>
    %232 = arith.truncf %229 : vector<8x16xf32> to vector<8x16xbf16>
    %233 = arith.truncf %230 : vector<8x16xf32> to vector<8x16xbf16>
    %cst_101 = arith.constant dense<0.000000e+00> : vector<8x8xf32>
    %234 = tpu.matmul %232, %233, %cst_101 {dimension_numbers = #tpu.dot_dimension_numbers<[1], [1], [0], [0], [0, 0, 1, 0], [], []>} : vector<8x16xbf16>, vector<8x16xbf16>, vector<8x8xf32> -> vector<8x8xf32>
    %cst_102 = arith.constant 2.500000e-01 : f32
    %235 = vector.broadcast %cst_102 : f32 to vector<8x8xf32>
    %236 = arith.mulf %234, %235 : vector<8x8xf32>
    %237 = vector.broadcast %228 : vector<1x8xf32> to vector<8x8xf32>
    %238 = arith.addf %236, %237 : vector<8x8xf32>
    %239 = math.exp %238 : vector<8x8xf32>
    %cst_103 = arith.constant dense<0.000000e+00> : vector<8xf32>
    %240 = vector.multi_reduction <add>, %239, %cst_103 [1] : vector<8x8xf32> to vector<8xf32>
    %241 = vector.shape_cast %240 : vector<8xf32> to vector<8x1xf32>
    %cst_104 = arith.constant 9.99999968E-21 : f32
    %242 = vector.broadcast %cst_104 : f32 to vector<8x1xf32>
    %243 = arith.maximumf %241, %242 : vector<8x1xf32>
    %244 = tpu.reciprocal %243 {approx = true} : vector<8x1xf32> -> vector<8x1xf32>
    %245 = vector.broadcast %244 : vector<8x1xf32> to vector<8x8xf32>
    %246 = arith.mulf %239, %245 : vector<8x8xf32>
    %247 = arith.truncf %246 : vector<8x8xf32> to vector<8x8xbf16>
    %248 = arith.truncf %231 : vector<8x16xf32> to vector<8x16xbf16>
    %cst_105 = arith.constant dense<0.000000e+00> : vector<8x16xf32>
    %249 = tpu.matmul %247, %248, %cst_105 {dimension_numbers = #tpu.dot_dimension_numbers<[1], [0], [0], [1], [0, 0, 1, 1], [], []>} : vector<8x8xbf16>, vector<8x16xbf16>, vector<8x16xf32> -> vector<8x16xf32>
    %c0_106 = arith.constant 0 : index
    %c0_107 = arith.constant 0 : index
    %250 = vector.load %arg22[%c0_106, %c0_107] : memref<16x32xf32, #tpu.memory_space<vmem>>, vector<8x16xf32>
    tpu.vector_store %arg22[%c0_106, %c0_107], %249 {strides = array<i32>} : memref<16x32xf32, #tpu.memory_space<vmem>>, vector<8x16xf32>,
    %251 = vector.extract_strided_slice %227 {offsets = [0, 16], sizes = [8, 16], strides = [1, 1]} : vector<16x96xf32> to vector<8x16xf32>
    %252 = vector.extract_strided_slice %227 {offsets = [0, 48], sizes = [8, 16], strides = [1, 1]} : vector<16x96xf32> to vector<8x16xf32>
    %253 = vector.extract_strided_slice %227 {offsets = [0, 80], sizes = [8, 16], strides = [1, 1]} : vector<16x96xf32> to vector<8x16xf32>
    %254 = arith.truncf %251 : vector<8x16xf32> to vector<8x16xbf16>
    %255 = arith.truncf %252 : vector<8x16xf32> to vector<8x16xbf16>
    %cst_108 = arith.constant dense<0.000000e+00> : vector<8x8xf32>
    %256 = tpu.matmul %254, %255, %cst_108 {dimension_numbers = #tpu.dot_dimension_numbers<[1], [1], [0], [0], [0, 0, 1, 0], [], []>} : vector<8x16xbf16>, vector<8x16xbf16>, vector<8x8xf32> -> vector<8x8xf32>
    %cst_109 = arith.constant 2.500000e-01 : f32
    %257 = vector.broadcast %cst_109 : f32 to vector<8x8xf32>
    %258 = arith.mulf %256, %257 : vector<8x8xf32>
    %259 = vector.broadcast %228 : vector<1x8xf32> to vector<8x8xf32>
    %260 = arith.addf %258, %259 : vector<8x8xf32>
    %261 = math.exp %260 : vector<8x8xf32>
    %cst_110 = arith.constant dense<0.000000e+00> : vector<8xf32>
    %262 = vector.multi_reduction <add>, %261, %cst_110 [1] : vector<8x8xf32> to vector<8xf32>
    %263 = vector.shape_cast %262 : vector<8xf32> to vector<8x1xf32>
    %cst_111 = arith.constant 9.99999968E-21 : f32
    %264 = vector.broadcast %cst_111 : f32 to vector<8x1xf32>
    %265 = arith.maximumf %263, %264 : vector<8x1xf32>
    %266 = tpu.reciprocal %265 {approx = true} : vector<8x1xf32> -> vector<8x1xf32>
    %267 = vector.broadcast %266 : vector<8x1xf32> to vector<8x8xf32>
    %268 = arith.mulf %261, %267 : vector<8x8xf32>
    %269 = arith.truncf %268 : vector<8x8xf32> to vector<8x8xbf16>
    %270 = arith.truncf %253 : vector<8x16xf32> to vector<8x16xbf16>
    %cst_112 = arith.constant dense<0.000000e+00> : vector<8x16xf32>
    %271 = tpu.matmul %269, %270, %cst_112 {dimension_numbers = #tpu.dot_dimension_numbers<[1], [0], [0], [1], [0, 0, 1, 1], [], []>} : vector<8x8xbf16>, vector<8x16xbf16>, vector<8x16xf32> -> vector<8x16xf32>
    %c0_113 = arith.constant 0 : index
    %c16_114 = arith.constant 16 : index
    %272 = vector.load %arg22[%c0_113, %c16_114] : memref<16x32xf32, #tpu.memory_space<vmem>>, vector<8x16xf32>
    tpu.vector_store %arg22[%c0_113, %c16_114], %271 {strides = array<i32>} : memref<16x32xf32, #tpu.memory_space<vmem>>, vector<8x16xf32>,
    %273 = vector.extract_strided_slice %4 {offsets = [1, 0], sizes = [1, 8], strides = [1, 1]} : vector<2x8xf32> to vector<1x8xf32>
    %274 = vector.extract_strided_slice %227 {offsets = [8, 0], sizes = [8, 16], strides = [1, 1]} : vector<16x96xf32> to vector<8x16xf32>
    %275 = vector.extract_strided_slice %227 {offsets = [8, 32], sizes = [8, 16], strides = [1, 1]} : vector<16x96xf32> to vector<8x16xf32>
    %276 = vector.extract_strided_slice %227 {offsets = [8, 64], sizes = [8, 16], strides = [1, 1]} : vector<16x96xf32> to vector<8x16xf32>
    %277 = arith.truncf %274 : vector<8x16xf32> to vector<8x16xbf16>
    %278 = arith.truncf %275 : vector<8x16xf32> to vector<8x16xbf16>
    %cst_115 = arith.constant dense<0.000000e+00> : vector<8x8xf32>
    %279 = tpu.matmul %277, %278, %cst_115 {dimension_numbers = #tpu.dot_dimension_numbers<[1], [1], [0], [0], [0, 0, 1, 0], [], []>} : vector<8x16xbf16>, vector<8x16xbf16>, vector<8x8xf32> -> vector<8x8xf32>
    %cst_116 = arith.constant 2.500000e-01 : f32
    %280 = vector.broadcast %cst_116 : f32 to vector<8x8xf32>
    %281 = arith.mulf %279, %280 : vector<8x8xf32>
    %282 = vector.broadcast %273 : vector<1x8xf32> to vector<8x8xf32>
    %283 = arith.addf %281, %282 : vector<8x8xf32>
    %284 = math.exp %283 : vector<8x8xf32>
    %cst_117 = arith.constant dense<0.000000e+00> : vector<8xf32>
    %285 = vector.multi_reduction <add>, %284, %cst_117 [1] : vector<8x8xf32> to vector<8xf32>
    %286 = vector.shape_cast %285 : vector<8xf32> to vector<8x1xf32>
    %cst_118 = arith.constant 9.99999968E-21 : f32
    %287 = vector.broadcast %cst_118 : f32 to vector<8x1xf32>
    %288 = arith.maximumf %286, %287 : vector<8x1xf32>
    %289 = tpu.reciprocal %288 {approx = true} : vector<8x1xf32> -> vector<8x1xf32>
    %290 = vector.broadcast %289 : vector<8x1xf32> to vector<8x8xf32>
    %291 = arith.mulf %284, %290 : vector<8x8xf32>
    %292 = arith.truncf %291 : vector<8x8xf32> to vector<8x8xbf16>
    %293 = arith.truncf %276 : vector<8x16xf32> to vector<8x16xbf16>
    %cst_119 = arith.constant dense<0.000000e+00> : vector<8x16xf32>
    %294 = tpu.matmul %292, %293, %cst_119 {dimension_numbers = #tpu.dot_dimension_numbers<[1], [0], [0], [1], [0, 0, 1, 1], [], []>} : vector<8x8xbf16>, vector<8x16xbf16>, vector<8x16xf32> -> vector<8x16xf32>
    %c8_120 = arith.constant 8 : index
    %c0_121 = arith.constant 0 : index
    %295 = vector.load %arg22[%c8_120, %c0_121] : memref<16x32xf32, #tpu.memory_space<vmem>>, vector<8x16xf32>
    tpu.vector_store %arg22[%c8_120, %c0_121], %294 {strides = array<i32>} : memref<16x32xf32, #tpu.memory_space<vmem>>, vector<8x16xf32>,
    %296 = vector.extract_strided_slice %227 {offsets = [8, 16], sizes = [8, 16], strides = [1, 1]} : vector<16x96xf32> to vector<8x16xf32>
    %297 = vector.extract_strided_slice %227 {offsets = [8, 48], sizes = [8, 16], strides = [1, 1]} : vector<16x96xf32> to vector<8x16xf32>
    %298 = vector.extract_strided_slice %227 {offsets = [8, 80], sizes = [8, 16], strides = [1, 1]} : vector<16x96xf32> to vector<8x16xf32>
    %299 = arith.truncf %296 : vector<8x16xf32> to vector<8x16xbf16>
    %300 = arith.truncf %297 : vector<8x16xf32> to vector<8x16xbf16>
    %cst_122 = arith.constant dense<0.000000e+00> : vector<8x8xf32>
    %301 = tpu.matmul %299, %300, %cst_122 {dimension_numbers = #tpu.dot_dimension_numbers<[1], [1], [0], [0], [0, 0, 1, 0], [], []>} : vector<8x16xbf16>, vector<8x16xbf16>, vector<8x8xf32> -> vector<8x8xf32>
    %cst_123 = arith.constant 2.500000e-01 : f32
    %302 = vector.broadcast %cst_123 : f32 to vector<8x8xf32>
    %303 = arith.mulf %301, %302 : vector<8x8xf32>
    %304 = vector.broadcast %273 : vector<1x8xf32> to vector<8x8xf32>
    %305 = arith.addf %303, %304 : vector<8x8xf32>
    %306 = math.exp %305 : vector<8x8xf32>
    %cst_124 = arith.constant dense<0.000000e+00> : vector<8xf32>
    %307 = vector.multi_reduction <add>, %306, %cst_124 [1] : vector<8x8xf32> to vector<8xf32>
    %308 = vector.shape_cast %307 : vector<8xf32> to vector<8x1xf32>
    %cst_125 = arith.constant 9.99999968E-21 : f32
    %309 = vector.broadcast %cst_125 : f32 to vector<8x1xf32>
    %310 = arith.maximumf %308, %309 : vector<8x1xf32>
    %311 = tpu.reciprocal %310 {approx = true} : vector<8x1xf32> -> vector<8x1xf32>
    %312 = vector.broadcast %311 : vector<8x1xf32> to vector<8x8xf32>
    %313 = arith.mulf %306, %312 : vector<8x8xf32>
    %314 = arith.truncf %313 : vector<8x8xf32> to vector<8x8xbf16>
    %315 = arith.truncf %298 : vector<8x16xf32> to vector<8x16xbf16>
    %cst_126 = arith.constant dense<0.000000e+00> : vector<8x16xf32>
    %316 = tpu.matmul %314, %315, %cst_126 {dimension_numbers = #tpu.dot_dimension_numbers<[1], [0], [0], [1], [0, 0, 1, 1], [], []>} : vector<8x8xbf16>, vector<8x16xbf16>, vector<8x16xf32> -> vector<8x16xf32>
    %c8_127 = arith.constant 8 : index
    %c16_128 = arith.constant 16 : index
    %317 = vector.load %arg22[%c8_127, %c16_128] : memref<16x32xf32, #tpu.memory_space<vmem>>, vector<8x16xf32>
    tpu.vector_store %arg22[%c8_127, %c16_128], %316 {strides = array<i32>} : memref<16x32xf32, #tpu.memory_space<vmem>>, vector<8x16xf32>,
    %c0_129 = arith.constant 0 : index
    %c0_130 = arith.constant 0 : index
    %318 = vector.load %arg22[%c0_129, %c0_130] : memref<16x32xf32, #tpu.memory_space<vmem>>, vector<16x32xf32>
    %319 = arith.truncf %318 : vector<16x32xf32> to vector<16x32xbf16>
    %c1_131 = arith.constant 1 : index
    %c0_132 = arith.constant 0 : index
    %c0_133 = arith.constant 0 : index
    %320 = vector.load %arg7[%c1_131, %c0_132, %c0_133] : memref<2x32x32xbf16, #tpu.memory_space<vmem>>, vector<1x32x32xbf16>
    %321 = vector.shape_cast %320 : vector<1x32x32xbf16> to vector<32x32xbf16>
    %cst_134 = arith.constant dense<0.000000e+00> : vector<16x32xf32>
    %322 = tpu.matmul %319, %321, %cst_134 {dimension_numbers = #tpu.dot_dimension_numbers<[1], [0], [0], [1], [0, 0, 1, 1], [], []>} : vector<16x32xbf16>, vector<32x32xbf16>, vector<16x32xf32> -> vector<16x32xf32>
    %c1_135 = arith.constant 1 : index
    %c0_136 = arith.constant 0 : index
    %c0_137 = arith.constant 0 : index
    %323 = vector.load %arg8[%c1_135, %c0_136, %c0_137] : memref<2x1x32xf32, #tpu.memory_space<vmem>>, vector<1x1x32xf32>
    %324 = vector.shape_cast %323 : vector<1x1x32xf32> to vector<1x32xf32>
    %325 = vector.broadcast %324 : vector<1x32xf32> to vector<16x32xf32>
    %326 = arith.addf %322, %325 : vector<16x32xf32>
    %327 = arith.addf %326, %219 : vector<16x32xf32>
    %c1_138 = arith.constant 1 : index
    %c0_139 = arith.constant 0 : index
    %c0_140 = arith.constant 0 : index
    %328 = vector.load %arg9[%c1_138, %c0_139, %c0_140] : memref<2x1x32xf32, #tpu.memory_space<vmem>>, vector<1x1x32xf32>
    %329 = vector.shape_cast %328 : vector<1x1x32xf32> to vector<1x32xf32>
    %c1_141 = arith.constant 1 : index
    %c0_142 = arith.constant 0 : index
    %c0_143 = arith.constant 0 : index
    %330 = vector.load %arg10[%c1_141, %c0_142, %c0_143] : memref<2x1x32xf32, #tpu.memory_space<vmem>>, vector<1x1x32xf32>
    %331 = vector.shape_cast %330 : vector<1x1x32xf32> to vector<1x32xf32>
    %cst_144 = arith.constant dense<0.000000e+00> : vector<16xf32>
    %332 = vector.multi_reduction <add>, %327, %cst_144 [1] : vector<16x32xf32> to vector<16xf32>
    %333 = vector.shape_cast %332 : vector<16xf32> to vector<16x1xf32>
    %cst_145 = arith.constant 3.200000e+01 : f32
    %334 = vector.broadcast %cst_145 : f32 to vector<16x1xf32>
    %335 = arith.divf %333, %334 : vector<16x1xf32>
    %336 = vector.broadcast %335 : vector<16x1xf32> to vector<16x32xf32>
    %337 = arith.subf %327, %336 : vector<16x32xf32>
    %338 = arith.mulf %337, %337 : vector<16x32xf32>
    %cst_146 = arith.constant dense<0.000000e+00> : vector<16xf32>
    %339 = vector.multi_reduction <add>, %338, %cst_146 [1] : vector<16x32xf32> to vector<16xf32>
    %340 = vector.shape_cast %339 : vector<16xf32> to vector<16x1xf32>
    %cst_147 = arith.constant 3.200000e+01 : f32
    %341 = vector.broadcast %cst_147 : f32 to vector<16x1xf32>
    %342 = arith.divf %340, %341 : vector<16x1xf32>
    %343 = vector.broadcast %335 : vector<16x1xf32> to vector<16x32xf32>
    %344 = arith.subf %327, %343 : vector<16x32xf32>
    %cst_148 = arith.constant 9.99999996E-13 : f32
    %345 = vector.broadcast %cst_148 : f32 to vector<16x1xf32>
    %346 = arith.addf %342, %345 : vector<16x1xf32>
    %347 = math.rsqrt %346 : vector<16x1xf32>
    %348 = vector.broadcast %347 : vector<16x1xf32> to vector<16x32xf32>
    %349 = arith.mulf %344, %348 : vector<16x32xf32>
    %350 = vector.broadcast %329 : vector<1x32xf32> to vector<16x32xf32>
    %351 = arith.mulf %349, %350 : vector<16x32xf32>
    %352 = vector.broadcast %331 : vector<1x32xf32> to vector<16x32xf32>
    %353 = arith.addf %351, %352 : vector<16x32xf32>
    %354 = arith.truncf %353 : vector<16x32xf32> to vector<16x32xbf16>
    %c1_149 = arith.constant 1 : index
    %c0_150 = arith.constant 0 : index
    %c0_151 = arith.constant 0 : index
    %355 = vector.load %arg11[%c1_149, %c0_150, %c0_151] : memref<2x32x128xbf16, #tpu.memory_space<vmem>>, vector<1x32x128xbf16>
    %356 = vector.shape_cast %355 : vector<1x32x128xbf16> to vector<32x128xbf16>
    %cst_152 = arith.constant dense<0.000000e+00> : vector<16x128xf32>
    %357 = tpu.matmul %354, %356, %cst_152 {dimension_numbers = #tpu.dot_dimension_numbers<[1], [0], [0], [1], [0, 0, 1, 1], [], []>} : vector<16x32xbf16>, vector<32x128xbf16>, vector<16x128xf32> -> vector<16x128xf32>
    %c1_153 = arith.constant 1 : index
    %c0_154 = arith.constant 0 : index
    %c0_155 = arith.constant 0 : index
    %358 = vector.load %arg12[%c1_153, %c0_154, %c0_155] : memref<2x1x128xf32, #tpu.memory_space<vmem>>, vector<1x1x128xf32>
    %359 = vector.shape_cast %358 : vector<1x1x128xf32> to vector<1x128xf32>
    %360 = vector.broadcast %359 : vector<1x128xf32> to vector<16x128xf32>
    %361 = arith.addf %357, %360 : vector<16x128xf32>
    %cst_156 = arith.constant 5.000000e-01 : f32
    %362 = vector.broadcast %cst_156 : f32 to vector<16x128xf32>
    %363 = arith.mulf %362, %361 : vector<16x128xf32>
    %cst_157 = arith.constant 4.471500e-02 : f32
    %364 = vector.broadcast %cst_157 : f32 to vector<16x128xf32>
    %365 = arith.mulf %364, %361 : vector<16x128xf32>
    %366 = arith.mulf %365, %361 : vector<16x128xf32>
    %367 = arith.mulf %366, %361 : vector<16x128xf32>
    %368 = arith.addf %361, %367 : vector<16x128xf32>
    %cst_158 = arith.constant 0.797884583 : f32
    %369 = vector.broadcast %cst_158 : f32 to vector<16x128xf32>
    %370 = arith.mulf %369, %368 : vector<16x128xf32>
    %371 = math.tanh %370 : vector<16x128xf32>
    %cst_159 = arith.constant 1.000000e+00 : f32
    %372 = vector.broadcast %cst_159 : f32 to vector<16x128xf32>
    %373 = arith.addf %372, %371 : vector<16x128xf32>
    %374 = arith.mulf %363, %373 : vector<16x128xf32>
    %375 = arith.truncf %374 : vector<16x128xf32> to vector<16x128xbf16>
    %c1_160 = arith.constant 1 : index
    %c0_161 = arith.constant 0 : index
    %c0_162 = arith.constant 0 : index
    %376 = vector.load %arg13[%c1_160, %c0_161, %c0_162] : memref<2x128x32xbf16, #tpu.memory_space<vmem>>, vector<1x128x32xbf16>
    %377 = vector.shape_cast %376 : vector<1x128x32xbf16> to vector<128x32xbf16>
    %cst_163 = arith.constant dense<0.000000e+00> : vector<16x32xf32>
    %378 = tpu.matmul %375, %377, %cst_163 {dimension_numbers = #tpu.dot_dimension_numbers<[1], [0], [0], [1], [0, 0, 1, 1], [], []>} : vector<16x128xbf16>, vector<128x32xbf16>, vector<16x32xf32> -> vector<16x32xf32>
    %c1_164 = arith.constant 1 : index
    %c0_165 = arith.constant 0 : index
    %c0_166 = arith.constant 0 : index
    %379 = vector.load %arg14[%c1_164, %c0_165, %c0_166] : memref<2x1x32xf32, #tpu.memory_space<vmem>>, vector<1x1x32xf32>
    %380 = vector.shape_cast %379 : vector<1x1x32xf32> to vector<1x32xf32>
    %381 = vector.broadcast %380 : vector<1x32xf32> to vector<16x32xf32>
    %382 = arith.addf %378, %381 : vector<16x32xf32>
    %383 = arith.addf %382, %353 : vector<16x32xf32>
    %c1_167 = arith.constant 1 : index
    %c0_168 = arith.constant 0 : index
    %c0_169 = arith.constant 0 : index
    %384 = vector.load %arg15[%c1_167, %c0_168, %c0_169] : memref<2x1x32xf32, #tpu.memory_space<vmem>>, vector<1x1x32xf32>
    %385 = vector.shape_cast %384 : vector<1x1x32xf32> to vector<1x32xf32>
    %c1_170 = arith.constant 1 : index
    %c0_171 = arith.constant 0 : index
    %c0_172 = arith.constant 0 : index
    %386 = vector.load %arg16[%c1_170, %c0_171, %c0_172] : memref<2x1x32xf32, #tpu.memory_space<vmem>>, vector<1x1x32xf32>
    %387 = vector.shape_cast %386 : vector<1x1x32xf32> to vector<1x32xf32>
    %cst_173 = arith.constant dense<0.000000e+00> : vector<16xf32>
    %388 = vector.multi_reduction <add>, %383, %cst_173 [1] : vector<16x32xf32> to vector<16xf32>
    %389 = vector.shape_cast %388 : vector<16xf32> to vector<16x1xf32>
    %cst_174 = arith.constant 3.200000e+01 : f32
    %390 = vector.broadcast %cst_174 : f32 to vector<16x1xf32>
    %391 = arith.divf %389, %390 : vector<16x1xf32>
    %392 = vector.broadcast %391 : vector<16x1xf32> to vector<16x32xf32>
    %393 = arith.subf %383, %392 : vector<16x32xf32>
    %394 = arith.mulf %393, %393 : vector<16x32xf32>
    %cst_175 = arith.constant dense<0.000000e+00> : vector<16xf32>
    %395 = vector.multi_reduction <add>, %394, %cst_175 [1] : vector<16x32xf32> to vector<16xf32>
    %396 = vector.shape_cast %395 : vector<16xf32> to vector<16x1xf32>
    %cst_176 = arith.constant 3.200000e+01 : f32
    %397 = vector.broadcast %cst_176 : f32 to vector<16x1xf32>
    %398 = arith.divf %396, %397 : vector<16x1xf32>
    %399 = vector.broadcast %391 : vector<16x1xf32> to vector<16x32xf32>
    %400 = arith.subf %383, %399 : vector<16x32xf32>
    %cst_177 = arith.constant 9.99999996E-13 : f32
    %401 = vector.broadcast %cst_177 : f32 to vector<16x1xf32>
    %402 = arith.addf %398, %401 : vector<16x1xf32>
    %403 = math.rsqrt %402 : vector<16x1xf32>
    %404 = vector.broadcast %403 : vector<16x1xf32> to vector<16x32xf32>
    %405 = arith.mulf %400, %404 : vector<16x32xf32>
    %406 = vector.broadcast %385 : vector<1x32xf32> to vector<16x32xf32>
    %407 = arith.mulf %405, %406 : vector<16x32xf32>
    %408 = vector.broadcast %387 : vector<1x32xf32> to vector<16x32xf32>
    %409 = arith.addf %407, %408 : vector<16x32xf32>
    %410 = vector.extract_strided_slice %409 {offsets = [0, 0], sizes = [1, 32], strides = [1, 1]} : vector<16x32xf32> to vector<1x32xf32>
    %411 = vector.extract_strided_slice %409 {offsets = [8, 0], sizes = [1, 32], strides = [1, 1]} : vector<16x32xf32> to vector<1x32xf32>
    %412 = tpu.concatenate %410, %411 in 0 : vector<1x32xf32>, vector<1x32xf32> -> vector<2x32xf32>
    %413 = arith.truncf %412 : vector<2x32xf32> to vector<2x32xbf16>
    %c0_178 = arith.constant 0 : index
    %c0_179 = arith.constant 0 : index
    %414 = vector.load %arg17[%c0_178, %c0_179] : memref<32x32xbf16, #tpu.memory_space<vmem>>, vector<32x32xbf16>
    %cst_180 = arith.constant dense<0.000000e+00> : vector<2x32xf32>
    %415 = tpu.matmul %413, %414, %cst_180 {dimension_numbers = #tpu.dot_dimension_numbers<[1], [0], [0], [1], [0, 0, 1, 1], [], []>} : vector<2x32xbf16>, vector<32x32xbf16>, vector<2x32xf32> -> vector<2x32xf32>
    %c0_181 = arith.constant 0 : index
    %c0_182 = arith.constant 0 : index
    %416 = vector.load %arg18[%c0_181, %c0_182] : memref<1x32xf32, #tpu.memory_space<vmem>>, vector<1x32xf32>
    %417 = vector.broadcast %416 : vector<1x32xf32> to vector<2x32xf32>
    %418 = arith.addf %415, %417 : vector<2x32xf32>
    %cst_183 = arith.constant 0.000000e+00 : f32
    %419 = vector.broadcast %cst_183 : f32 to vector<2x32xf32>
    %420 = arith.maximumf %418, %419 : vector<2x32xf32>
    %421 = arith.truncf %420 : vector<2x32xf32> to vector<2x32xbf16>
    %c0_184 = arith.constant 0 : index
    %c0_185 = arith.constant 0 : index
    %422 = vector.load %arg19[%c0_184, %c0_185] : memref<32x1xbf16, #tpu.memory_space<vmem>>, vector<32x1xbf16>
    %cst_186 = arith.constant dense<0.000000e+00> : vector<2x1xf32>
    %423 = tpu.matmul %421, %422, %cst_186 {dimension_numbers = #tpu.dot_dimension_numbers<[1], [0], [0], [1], [0, 0, 1, 1], [], []>} : vector<2x32xbf16>, vector<32x1xbf16>, vector<2x1xf32> -> vector<2x1xf32>
    %c0_187 = arith.constant 0 : index
    %c0_188 = arith.constant 0 : index
    %424 = vector.load %arg20[%c0_187, %c0_188] : memref<1x1xf32, #tpu.memory_space<vmem>>, vector<1x1xf32>
    %425 = vector.broadcast %424 : vector<1x1xf32> to vector<2x1xf32>
    %426 = arith.addf %423, %425 : vector<2x1xf32>
    %c0_189 = arith.constant 0 : index
    %c0_190 = arith.constant 0 : index
    %427 = vector.load %arg21[%c0_189, %c0_190] : memref<2x1xf32, #tpu.memory_space<vmem>>, vector<2x1xf32>
    tpu.vector_store %arg21[%c0_189, %c0_190], %426 {strides = array<i32>} : memref<2x1xf32, #tpu.memory_space<vmem>>, vector<2x1xf32>,
    return
  }
  func.func @transform_0(%arg0: i32) -> (i32, i32) {
    %c0_i32 = arith.constant 0 : i32
    %c0_i32_0 = arith.constant 0 : i32
    %c0_i32_1 = arith.constant 0 : i32
    return %c0_i32, %c0_i32_0 : i32, i32
  }
  func.func @transform_1(%arg0: i32) -> (i32, i32) {
    %c0_i32 = arith.constant 0 : i32
    %c0_i32_0 = arith.constant 0 : i32
    %c0_i32_1 = arith.constant 0 : i32
    return %c0_i32, %c0_i32_0 : i32, i32
  }
  func.func @transform_2(%arg0: i32) -> (i32, i32) {
    %c0_i32 = arith.constant 0 : i32
    %c0_i32_0 = arith.constant 0 : i32
    %c0_i32_1 = arith.constant 0 : i32
    return %c0_i32, %c0_i32_0 : i32, i32
  }
  func.func @transform_3(%arg0: i32) -> (i32, i32) {
    %c0_i32 = arith.constant 0 : i32
    %c0_i32_0 = arith.constant 0 : i32
    %c0_i32_1 = arith.constant 0 : i32
    return %c0_i32, %c0_i32_0 : i32, i32
  }
  func.func @transform_4(%arg0: i32) -> (i32, i32, i32) {
    %c0_i32 = arith.constant 0 : i32
    %c0_i32_0 = arith.constant 0 : i32
    %c0_i32_1 = arith.constant 0 : i32
    %c0_i32_2 = arith.constant 0 : i32
    return %c0_i32, %c0_i32_0, %c0_i32_1 : i32, i32, i32
  }
  func.func @transform_5(%arg0: i32) -> (i32, i32, i32) {
    %c0_i32 = arith.constant 0 : i32
    %c0_i32_0 = arith.constant 0 : i32
    %c0_i32_1 = arith.constant 0 : i32
    %c0_i32_2 = arith.constant 0 : i32
    return %c0_i32, %c0_i32_0, %c0_i32_1 : i32, i32, i32
  }
  func.func @transform_6(%arg0: i32) -> (i32, i32, i32) {
    %c0_i32 = arith.constant 0 : i32
    %c0_i32_0 = arith.constant 0 : i32
    %c0_i32_1 = arith.constant 0 : i32
    %c0_i32_2 = arith.constant 0 : i32
    return %c0_i32, %c0_i32_0, %c0_i32_1 : i32, i32, i32
  }
  func.func @transform_7(%arg0: i32) -> (i32, i32, i32) {
    %c0_i32 = arith.constant 0 : i32
    %c0_i32_0 = arith.constant 0 : i32
    %c0_i32_1 = arith.constant 0 : i32
    %c0_i32_2 = arith.constant 0 : i32
    return %c0_i32, %c0_i32_0, %c0_i32_1 : i32, i32, i32
  }
  func.func @transform_8(%arg0: i32) -> (i32, i32, i32) {
    %c0_i32 = arith.constant 0 : i32
    %c0_i32_0 = arith.constant 0 : i32
    %c0_i32_1 = arith.constant 0 : i32
    %c0_i32_2 = arith.constant 0 : i32
    return %c0_i32, %c0_i32_0, %c0_i32_1 : i32, i32, i32
  }
  func.func @transform_9(%arg0: i32) -> (i32, i32, i32) {
    %c0_i32 = arith.constant 0 : i32
    %c0_i32_0 = arith.constant 0 : i32
    %c0_i32_1 = arith.constant 0 : i32
    %c0_i32_2 = arith.constant 0 : i32
    return %c0_i32, %c0_i32_0, %c0_i32_1 : i32, i32, i32
  }
  func.func @transform_10(%arg0: i32) -> (i32, i32, i32) {
    %c0_i32 = arith.constant 0 : i32
    %c0_i32_0 = arith.constant 0 : i32
    %c0_i32_1 = arith.constant 0 : i32
    %c0_i32_2 = arith.constant 0 : i32
    return %c0_i32, %c0_i32_0, %c0_i32_1 : i32, i32, i32
  }
  func.func @transform_11(%arg0: i32) -> (i32, i32, i32) {
    %c0_i32 = arith.constant 0 : i32
    %c0_i32_0 = arith.constant 0 : i32
    %c0_i32_1 = arith.constant 0 : i32
    %c0_i32_2 = arith.constant 0 : i32
    return %c0_i32, %c0_i32_0, %c0_i32_1 : i32, i32, i32
  }
  func.func @transform_12(%arg0: i32) -> (i32, i32, i32) {
    %c0_i32 = arith.constant 0 : i32
    %c0_i32_0 = arith.constant 0 : i32
    %c0_i32_1 = arith.constant 0 : i32
    %c0_i32_2 = arith.constant 0 : i32
    return %c0_i32, %c0_i32_0, %c0_i32_1 : i32, i32, i32
  }
  func.func @transform_13(%arg0: i32) -> (i32, i32, i32) {
    %c0_i32 = arith.constant 0 : i32
    %c0_i32_0 = arith.constant 0 : i32
    %c0_i32_1 = arith.constant 0 : i32
    %c0_i32_2 = arith.constant 0 : i32
    return %c0_i32, %c0_i32_0, %c0_i32_1 : i32, i32, i32
  }
  func.func @transform_14(%arg0: i32) -> (i32, i32, i32) {
    %c0_i32 = arith.constant 0 : i32
    %c0_i32_0 = arith.constant 0 : i32
    %c0_i32_1 = arith.constant 0 : i32
    %c0_i32_2 = arith.constant 0 : i32
    return %c0_i32, %c0_i32_0, %c0_i32_1 : i32, i32, i32
  }
  func.func @transform_15(%arg0: i32) -> (i32, i32, i32) {
    %c0_i32 = arith.constant 0 : i32
    %c0_i32_0 = arith.constant 0 : i32
    %c0_i32_1 = arith.constant 0 : i32
    %c0_i32_2 = arith.constant 0 : i32
    return %c0_i32, %c0_i32_0, %c0_i32_1 : i32, i32, i32
  }
  func.func @transform_16(%arg0: i32) -> (i32, i32) {
    %c0_i32 = arith.constant 0 : i32
    %c0_i32_0 = arith.constant 0 : i32
    %c0_i32_1 = arith.constant 0 : i32
    return %c0_i32, %c0_i32_0 : i32, i32
  }
  func.func @transform_17(%arg0: i32) -> (i32, i32) {
    %c0_i32 = arith.constant 0 : i32
    %c0_i32_0 = arith.constant 0 : i32
    %c0_i32_1 = arith.constant 0 : i32
    return %c0_i32, %c0_i32_0 : i32, i32
  }
  func.func @transform_18(%arg0: i32) -> (i32, i32) {
    %c0_i32 = arith.constant 0 : i32
    %c0_i32_0 = arith.constant 0 : i32
    %c0_i32_1 = arith.constant 0 : i32
    return %c0_i32, %c0_i32_0 : i32, i32
  }
  func.func @transform_19(%arg0: i32) -> (i32, i32) {
    %c0_i32 = arith.constant 0 : i32
    %c0_i32_0 = arith.constant 0 : i32
    %c0_i32_1 = arith.constant 0 : i32
    return %c0_i32, %c0_i32_0 : i32, i32
  }
  func.func @transform_20(%arg0: i32) -> (i32, i32) {
    %c0_i32 = arith.constant 0 : i32
    %c0_i32_0 = arith.constant 0 : i32
    %c0_i32_1 = arith.constant 0 : i32
    return %c0_i32, %c0_i32_0 : i32, i32
  }
}

</mosaic_0001>

<bundles_post_ra>
// kernel: tpu_custom_call.1
= control target key start
LH: loop header
LB: loop body
LE: loop exit
PB: predicated region body
PF: predicated region fallthrough
CT: control target
= control target key end

     0   :  { %vm75_vm0 = vcmask 261120   ;;  %v2529_v15 = vmov 0.0   ;;  %vm2530_vm1 = vmmov 0   ;;  %s2532_s25 = smov 96   ;;  %vm191_vm2 = vcmask 130048   ;;  %s2536_s29 = smov 16   ;;  %s3086_s0 = inlined_call_operand.vmem [shape: f32[16,32], index: 0, kind: input, shape index: {}]   ;;  %s3087_s4 = inlined_call_operand.vmem [shape: bf16[2,32,96], index: 4, kind: input, shape index: {}]   ;;  %s3088_s2 = inlined_call_operand.vmem [shape: f32[1,32], index: 2, kind: input, shape index: {}]   ;;  %s3089_s3 = inlined_call_operand.vmem [shape: f32[1,32], index: 3, kind: input, shape index: {}]   ;;  %s3090_s5 = inlined_call_operand.vmem [shape: f32[2,1,96], index: 5, kind: input, shape index: {}]   ;;  %s3091_s1 = inlined_call_operand.vmem [shape: f32[2,8], index: 1, kind: input, shape index: {}]   ;;  %s3092_s6 = inlined_call_operand.vmem [shape: bf16[2,32,32], index: 6, kind: input, shape index: {}]   ;;  %s3093_s7 = inlined_call_operand.vmem [shape: f32[2,1,32], index: 7, kind: input, shape index: {}]   ;;  %s3094_s10 = inlined_call_operand.vmem [shape: bf16[2,32,128], index: 10, kind: input, shape index: {}]   ;;  %s3095_s8 = inlined_call_operand.vmem [shape: f32[2,1,32], index: 8, kind: input, shape index: {}]   ;;  %s3096_s9 = inlined_call_operand.vmem [shape: f32[2,1,32], index: 9, kind: input, shape index: {}]   ;;  %s3097_s12 = inlined_call_operand.vmem [shape: bf16[2,128,32], index: 12, kind: input, shape index: {}]   ;;  %s3098_s11 = inlined_call_operand.vmem [shape: f32[2,1,128], index: 11, kind: input, shape index: {}]   ;;  %s3099_s13 = inlined_call_operand.vmem [shape: f32[2,1,32], index: 13, kind: input, shape index: {}]   ;;  %s3100_s14 = inlined_call_operand.vmem [shape: f32[2,1,32], index: 14, kind: input, shape index: {}]   ;;  %s3101_s15 = inlined_call_operand.vmem [shape: f32[2,1,32], index: 15, kind: input, shape index: {}]   ;;  %s3102_s16 = inlined_call_operand.vmem [shape: bf16[32,32], index: 16, kind: input, shape index: {}]   ;;  %s3103_s18 = inlined_call_operand.vmem [shape: bf16[32,1], index: 18, kind: input, shape index: {}]   ;;  %s3104_s19 = inlined_call_operand.<no memory space> [shape: f32[1,1], index: 19, kind: input, shape index: {}]   ;;  %s3105_s17 = inlined_call_operand.vmem [shape: f32[1,32], index: 17, kind: input, shape index: {}]   ;;  %s3106_s20 = inlined_call_operand.vmem [shape: f32[2,1], index: 20, kind: output, shape index: {}]  }
   0x1   :  { %3110 = sst [smem:[#allocation4_spill]] %s3086_s0  ;;  %2229 = vmatprep.subr.bf16.mxu1 %v2529_v15  ;;  %2243 = vmatprep.subr.bf16.mxu0 %v2529_v15  ;;  %v239_v53 = vlaneseq  ;;  %v68_v54 = vld [vmem:[%s3091_s1] sm:$0x3]  ;;  %vm246_vm3 = vcmask 64512   ;;  %s2534_s1 = smov 48   ;;  %vm259_vm4 = vcmask 1043456  }
   0x2   :  { %3111 = sst [smem:[#allocation5_spill]] %s3087_s4  ;;  %s3115_s23 = sld [smem:[#allocation4_spill]]  ;;  %2233 = vmatprep.mubr.msk.bf16.mxu1 %vm2530_vm1, %v2529_v15  ;;  %2245 = vmatprep.mubr.msk.bf16.mxu0 %vm2530_vm1, %v2529_v15  ;;  %v69_v55 = vsub.f32 1.0, %v68_v54  ;;  %vm417_vm5 = vcmask 261248   ;;  %vm1900_vm6 = vcmask 1040384   ;;  %vm2037_vm7 = vcmask 1024  }
   0x3   :  { %3112 = sst [smem:[#allocation6_spill]] %s3088_s2  ;;  %s3116_s26 = sld [smem:[#allocation5_spill]]  ;;  %v240_v56 = vshrl.u32 %v239_v53, 7 }
   0x4   :  { %3113 = sst [smem:[#allocation7_spill]] %s3089_s3  ;;  %s3117_s30 = sld [smem:[#allocation6_spill]]  ;;  %v70_v57 = vmul.f32 -1e+09, %v69_v55 }
   0x5   :  { %3114 = sst [smem:[#allocation8_spill]] %s3090_s5  ;;  %s3118_s4 = sld [smem:[#allocation7_spill]]  ;;  %v241_v58 = vsub.s32 0, %v240_v56 }
   0x6   :  { %s3119_s24 = sld [smem:[#allocation8_spill]]  ;;  %s2531_s2 = smov 80  }
   0x7   :  { %s2533_s3 = smov 112   ;;  %v2725_v59 = vrot.slane %v70_v57, %v241_v58  ;;  %s2535_s5 = smov 64  }
   0x8   :  { %v71_v0 = vld [vmem:[%s3115_s23] sm:$0xff]  ;;  %v72_v1 = vld [vmem:[%s3115_s23 + $0x8] sm:$0xff] }
   0x9   :  { %v76_v2 = vsel %vm75_vm0, %v71_v0, 0.0  ;;  %v79_v3 = vsel %vm75_vm0, %v72_v1, 0.0  ;;  %v2437_v14 = vld [vmem:[%s3116_s26] sm:$0xff]   ;;  %v2438_v16 = vld [vmem:[%s3116_s26 + $0x8] sm:$0xff]  }
   0xa   :  { %77 = vadd.xlane.f32.xlu0 %v76_v2  ;;  %2230 = vmatpush3.bf16.msra.mxu1 %v2437_v14  ;;  %v2043_v25 = vld [vmem:[%s3117_s30] ss:$0 sm:$0xff] }
   0xb   :  { %2231 = vmatprep.subr.bf16.mxu1 %v2529_v15  ;;  %v2044_v29 = vld [vmem:[%s3118_s4] ss:$0 sm:$0xff] }
   0xc   :  { %v2045_v34 = vld [vmem:[%s3119_s24] ss:$0 sm:$0xff] }
   0xe   :  { %80 = vadd.xlane.f32.xlu0 %v79_v3  ;;  %2232 = vmatpush3.bf16.msra.mxu1 %v2438_v16 }
   0xf   :  { %2237 = vmatprep.subr.bf16.mxu1 %v2529_v15 }
  0x97   :  { %v78_v4 = vpop.xlane.xlu0 %77 }
  0x98   :  { %v83_v5 = vmul.f32 0.03125, %v78_v4 }
  0x9a   :  { %v85_v6 = vsub.f32 %v71_v0, %v83_v5 }
  0x9b   :  { %v81_v7 = vpop.xlane.xlu0 %80 }
  0x9c   :  { %v84_v8 = vmul.f32 0.03125, %v81_v7  ;;  %v87_v9 = vmul.f32 %v85_v6, %v85_v6 }
  0x9e   :  { %v86_v10 = vsub.f32 %v72_v1, %v84_v8  ;;  %v89_v11 = vsel %vm75_vm0, %v87_v9, 0.0  ;;  %v472_v9 = vsub.s32 1, %v240_v56 }
  0x9f   :  { %90 = vadd.xlane.f32.xlu1 %v89_v11 }
  0xa0   :  { %v88_v12 = vmul.f32 %v86_v10, %v86_v10  ;;  %v2729_v11 = vrot.slane %v70_v57, %v472_v9 }
  0xa2   :  { %v92_v13 = vsel %vm75_vm0, %v88_v12, 0.0 }
  0xa3   :  { %93 = vadd.xlane.f32.xlu1 %v92_v13 }
 0x12c   :  { %v91_v17 = vpop.xlane.xlu1 %90 }
 0x12d   :  { %v95_v18 = vmul.f32 0.03125, %v91_v17 }
 0x12f   :  { %v97_v19 = vadd.f32 1e-12, %v95_v18 }
 0x130   :  { %v94_v20 = vpop.xlane.xlu1 %93 }
 0x131   :  { %2469 = vrsqrt.f32 %v97_v19  ;;  %v96_v21 = vmul.f32 0.03125, %v94_v20 }
 0x133   :  { %v98_v22 = vadd.f32 1e-12, %v96_v21 }
 0x135   :  { %2471 = vrsqrt.f32 %v98_v22 }
 0x13b   :  { %v2470_v23 = vpop.eup %2469 }
 0x13c   :  { %v101_v24 = vmul.f32 %v2470_v23, %v85_v6 }
 0x13e   :  { %v109_v28 = vmul.f32 %v2043_v25, %v101_v24 }
 0x13f   :  { %v2472_v26 = vpop.eup %2471 }
 0x140   :  { %v102_v27 = vmul.f32 %v2472_v26, %v86_v10  ;;  %v2672_v31 = vadd.f32 %v2044_v29, %v109_v28 }
 0x142   :  { %v110_v30 = vmul.f32 %v2043_v25, %v102_v27 }
 0x144   :  { %v2674_v32 = vadd.f32 %v2044_v29, %v110_v30 }
 0x146   :  { %v119_v33 = vpack.c.bf16 %v2674_v32, %v2672_v31 }
 0x148   :  { %2234 = vmatmul.mubr.msk.bf16.vlgmr.msra.gmra.mrb[0].mxu1 %vm75_vm0, %v119_v33 }
 0x149   :  { %2239 = vmatprep.mubr.msk.bf16.mxu1 %vm2530_vm1, %v2529_v15 }
 0x21b   :  { %v180_v35 = vpop.f32.mrb[0].mxu1 }
 0x21c   :  { %v181_v36 = vadd.f32 %v2045_v34, %v180_v35  ;;  %v2235_v37 = vpop.f32.mrb[1].mxu1 }
 0x21d   :  { %v183_v38 = vpop.f32.mrb[2].mxu1 }
 0x21e   :  { %v2684_v39 = vpack.c.bf16 %v181_v36, %v181_v36  ;;  %v184_v40 = vadd.f32 %v2045_v34, %v183_v38  ;;  %v2236_v41 = vpop.f32.mrb[3].mxu1 }
 0x220   :  { %306 = vrot.lane.b32.xlu1 %v2684_v39, %s2531_s2  ;;  %189 = vrot.lane.b32.xlu0 %v2684_v39, %s2532_s25  ;;  %v2690_v42 = vpack.c.bf16 %v184_v40, %v184_v40 }
 0x224   :  { %304 = vrot.lane.b32.xlu1 %v2684_v39, %s2533_s3  ;;  %535 = vrot.lane.b32.xlu0 %v2690_v42, %s2531_s2 }
 0x228   :  { %421 = vrot.lane.b32.xlu1 %v2690_v42, %s2532_s25 }
 0x22c   :  { %533 = vrot.lane.b32.xlu1 %v2690_v42, %s2533_s3 }
 0x292   :  { %v190_v43 = vpop.permute.xlu0 %189  ;;  %v307_v45 = vpop.permute.xlu1 %306 }
 0x293   :  { %v196_v44 = vsel %vm191_vm2, %v190_v43, 0  ;;  %v312_v47 = vsel %vm191_vm2, %v307_v45, 0 }
 0x294   :  { %2238 = vmatpush3.bf16.xpose.msra.mxu1 %v196_v44 }
 0x295   :  { %2249 = vmatprep.subr.bf16.mxu1 %v2529_v15 }
 0x296   :  { %v305_v46 = vpop.permute.xlu1 %304  ;;  %v536_v50 = vpop.permute.xlu0 %535 }
 0x297   :  { %v541_v51 = vsel %vm191_vm2, %v536_v50, 0 }
 0x29a   :  { %v422_v48 = vpop.permute.xlu1 %421 }
 0x29b   :  { %2240 = vmatmul.mubr.msk.bf16.vlgmr.msra.gmra.mrb[4].mxu1 %vm191_vm2, %v2684_v39  ;;  %v427_v49 = vsel %vm191_vm2, %v422_v48, 0 }
 0x29c   :  { %2250 = vmatpush3.bf16.xpose.msra.mxu1 %v312_v47  ;;  %2251 = vmatprep.mubr.msk.bf16.mxu1 %vm2530_vm1, %v2529_v15 }
 0x29d   :  { %2261 = vmatprep.subr.bf16.mxu1 %v2529_v15 }
 0x29e   :  { %v534_v52 = vpop.permute.xlu1 %533 }
 0x2a3   :  { %2252 = vmatmul.mubr.msk.bf16.vlgmr.msra.gmra.mrb[8].mxu1 %vm191_vm2, %v305_v46 }
 0x2a4   :  { %2262 = vmatpush3.bf16.xpose.msra.mxu1 %v427_v49  ;;  %2263 = vmatprep.mubr.msk.bf16.mxu1 %vm2530_vm1, %v2529_v15 }
 0x2a5   :  { %2273 = vmatprep.subr.bf16.mxu1 %v2529_v15 }
 0x2ab   :  { %2264 = vmatmul.mubr.msk.bf16.vlgmr.msra.gmra.mrb[12].mxu1 %vm191_vm2, %v2690_v42 }
 0x2ac   :  { %2274 = vmatpush3.bf16.xpose.msra.mxu1 %v541_v51  ;;  %2275 = vmatprep.mubr.msk.bf16.mxu1 %vm2530_vm1, %v2529_v15 }
 0x2ad   :  { %2285 = vmatprep.subr.bf16.mxu1 %v2529_v15 }
 0x2b3   :  { %2276 = vmatmul.mubr.msk.bf16.vlgmr.msra.gmra.mrb[16].mxu1 %vm191_vm2, %v534_v52 }
 0x2b4   :  { %2289 = vmatprep.mubr.msk.bf16.mxu1 %vm2530_vm1, %v2529_v15 }
 0x36e   :  { %v232_v60 = vpop.f32.mrb[4].mxu1 }
 0x36f   :  { %v238_v61 = vmul.f32 0.25, %v232_v60  ;;  %v2241_v62 = vpop.f32.mrb[5].mxu1 }
 0x370   :  { %v235_v63 = vpop.f32.mrb[6].mxu1 }
 0x371   :  { %v243_v0 = vadd.f32 %v2725_v59, %v238_v61  ;;  %v2242_v1 = vpop.f32.mrb[7].mxu1 }
 0x373   :  { %v244_v2 = vmul.f32 1.442695, %v243_v0 }
 0x375   :  { %2473 = vpow2.f32 %v244_v2 }
 0x376   :  { %v348_v3 = vpop.f32.mrb[8].mxu1 }
 0x377   :  { %v354_v4 = vmul.f32 0.25, %v348_v3  ;;  %v2253_v5 = vpop.f32.mrb[9].mxu1 }
 0x378   :  { %v351_v6 = vpop.f32.mrb[10].mxu1 }
 0x379   :  { %v355_v7 = vadd.f32 %v354_v4, %v2725_v59  ;;  %v2254_v8 = vpop.f32.mrb[11].mxu1 }
 0x37b   :  { %v356_v10 = vmul.f32 1.442695, %v355_v7 }
 0x37d   :  { %2475 = vpow2.f32 %v356_v10  ;;  %v2439_v10 = vld [vmem:[%s3092_s6] sm:$0xff]  }
 0x37e   :  { %v463_v12 = vpop.f32.mrb[12].mxu1  ;;  %2286 = vmatpush3.bf16.msra.mxu1 %v2439_v10  ;;  %v2449_v10 = vld [vmem:[%s3097_s12 + $0x30] sm:$0xff]  }
 0x37f   :  { %v2474_v13 = vpop.eup %2473  ;;  %v469_v14 = vmul.f32 0.25, %v463_v12  ;;  %v2265_v16 = vpop.f32.mrb[13].mxu1  ;;  %v2440_v12 = vld [vmem:[%s3092_s6 + $0x8] sm:$0xff]   ;;  %2287 = vmatprep.subr.bf16.mxu1 %v2529_v15 }
 0x380   :  { %v466_v17 = vpop.f32.mrb[14].mxu1  ;;  %v247_v18 = vsel %vm246_vm3, %v2474_v13, 0.0 }
 0x381   :  { %v474_v19 = vadd.f32 %v2729_v11, %v469_v14  ;;  %248 = vadd.xlane.f32.xlu0 %v247_v18  ;;  %v2266_v20 = vpop.f32.mrb[15].mxu1 }
 0x382   :  { %2288 = vmatpush3.bf16.msra.mxu1 %v2440_v12  ;;  %v2450_v12 = vld [vmem:[%s3097_s12 + $0x38] sm:$0xff]  }
 0x383   :  { %v475_v21 = vmul.f32 1.442695, %v474_v19  ;;  %2301 = vmatprep.subr.bf16.mxu1 %v2529_v15 }
 0x385   :  { %2477 = vpow2.f32 %v475_v21 }
 0x386   :  { %v577_v22 = vpop.f32.mrb[16].mxu1 }
 0x387   :  { %v2476_v23 = vpop.eup %2475  ;;  %v583_v24 = vmul.f32 0.25, %v577_v22  ;;  %v2277_v25 = vpop.f32.mrb[17].mxu1 }
 0x388   :  { %v580_v26 = vpop.f32.mrb[18].mxu1  ;;  %v358_v27 = vsel %vm246_vm3, %v2476_v23, 0.0 }
 0x389   :  { %v584_v28 = vadd.f32 %v583_v24, %v2729_v11  ;;  %359 = vadd.xlane.f32.xlu1 %v358_v27  ;;  %v2278_v29 = vpop.f32.mrb[19].mxu1  ;;  %v2057_v27 = vld [vmem:[%s3093_s7] ss:$0 sm:$0xff] }
 0x38b   :  { %v585_v30 = vmul.f32 1.442695, %v584_v28 }
 0x38d   :  { %2479 = vpow2.f32 %v585_v30 }
 0x38f   :  { %v2478_v33 = vpop.eup %2477 }
 0x390   :  { %v477_v34 = vsel %vm246_vm3, %v2478_v33, 0.0 }
 0x391   :  { %478 = vadd.xlane.f32.xlu0 %v477_v34 }
 0x397   :  { %v2480_v35 = vpop.eup %2479 }
 0x398   :  { %v587_v36 = vsel %vm246_vm3, %v2480_v35, 0.0 }
 0x399   :  { %588 = vadd.xlane.f32.xlu0 %v587_v36 }
 0x39a   :  { %365 = vrot.lane.b32.xlu1 %v2684_v39, %s2534_s1 }
 0x39e   :  { %484 = vrot.lane.b32.xlu1 %v2690_v42, %s2535_s5 }
 0x3a2   :  { %594 = vrot.lane.b32.xlu1 %v2690_v42, %s2534_s1 }
 0x3af   :  { %254 = vrot.lane.b32.xlu0 %v2684_v39, %s2535_s5 }
 0x40e   :  { %v249_v37 = vpop.xlane.xlu0 %248 }
 0x40f   :  { %v250_v38 = vmax.f32 %v249_v37, 1e-20 }
 0x411   :  { %2481 = vrcp.f32 %v250_v38 }
 0x416   :  { %v360_v40 = vpop.xlane.xlu1 %359 }
 0x417   :  { %v361_v41 = vmax.f32 %v360_v40, 1e-20 }
 0x419   :  { %2483 = vrcp.f32 %v361_v41 }
 0x41a   :  { %v366_v50 = vpop.permute.xlu1 %365 }
 0x41b   :  { %v2482_v44 = vpop.eup %2481  ;;  %v371_v51 = vsel %vm259_vm4, %v366_v50, 0 }
 0x41c   :  { %v252_v47 = vmul.f32 %v2482_v44, %v2474_v13 }
 0x41e   :  { %v479_v43 = vpop.xlane.xlu0 %478  ;;  %v253_v42 = vpack.c.bf16 %v252_v47, %v252_v47  ;;  %v485_v54 = vpop.permute.xlu1 %484 }
 0x41f   :  { %v480_v46 = vmax.f32 %v479_v43, 1e-20  ;;  %v490_v57 = vsel %vm259_vm4, %v485_v54, 0 }
 0x421   :  { %2485 = vrcp.f32 %v480_v46 }
 0x422   :  { %v595_v60 = vpop.permute.xlu1 %594 }
 0x423   :  { %v2484_v39 = vpop.eup %2483  ;;  %v600_v63 = vsel %vm259_vm4, %v595_v60, 0 }
 0x424   :  { %v363_v53 = vmul.f32 %v2484_v39, %v2476_v23 }
 0x426   :  { %v589_v45 = vpop.xlane.xlu0 %588  ;;  %v364_v55 = vpack.c.bf16 %v363_v53, %v363_v53 }
 0x427   :  { %v590_v52 = vmax.f32 %v589_v45, 1e-20 }
 0x429   :  { %2487 = vrcp.f32 %v590_v52 }
 0x42a   :  { %v255_v48 = vpop.permute.xlu0 %254 }
 0x42b   :  { %v261_v49 = vsel %vm259_vm4, %v255_v48, 0  ;;  %v2486_v56 = vpop.eup %2485 }
 0x42c   :  { %2244 = vmatpush3.bf16.msra.mxu0 %v261_v49  ;;  %v482_v58 = vmul.f32 %v2486_v56, %v2478_v33 }
 0x42d   :  { %2255 = vmatprep.subr.bf16.mxu0 %v2529_v15 }
 0x42e   :  { %v483_v61 = vpack.c.bf16 %v482_v58, %v482_v58  ;;  %v2061_v58 = vld [vmem:[%s3095_s8] ss:$0 sm:$0xff] }
 0x42f   :  { %2246 = vmatmul.mubr.msk.bf16.vlgmr.msra.gmra.mrb[0].mxu0 %vm246_vm3, %v253_v42  ;;  %v2442_v42 = vld [vmem:[%s3094_s10 + $0x8] sm:$0xff]  }
 0x430   :  { %2256 = vmatpush3.bf16.msra.mxu0 %v371_v51  ;;  %2257 = vmatprep.mubr.msk.bf16.mxu0 %vm2530_vm1, %v2529_v15 }
 0x431   :  { %2267 = vmatprep.subr.bf16.mxu0 %v2529_v15 }
 0x433   :  { %v2488_v62 = vpop.eup %2487 }
 0x434   :  { %v592_v0 = vmul.f32 %v2488_v62, %v2480_v35 }
 0x436   :  { %v593_v1 = vpack.c.bf16 %v592_v0, %v592_v0 }
 0x437   :  { %2258 = vmatmul.mubr.msk.bf16.vlgmr.msra.gmra.mrb[4].mxu0 %vm246_vm3, %v364_v55 }
 0x438   :  { %2268 = vmatpush3.bf16.msra.mxu0 %v490_v57  ;;  %2269 = vmatprep.mubr.msk.bf16.mxu0 %vm2530_vm1, %v2529_v15 }
 0x439   :  { %2279 = vmatprep.subr.bf16.mxu0 %v2529_v15 }
 0x43f   :  { %2270 = vmatmul.mubr.msk.bf16.vlgmr.msra.gmra.mrb[8].mxu0 %vm246_vm3, %v483_v61 }
 0x440   :  { %2280 = vmatpush3.bf16.msra.mxu0 %v600_v63  ;;  %2281 = vmatprep.mubr.msk.bf16.mxu0 %vm2530_vm1, %v2529_v15  ;;  %v2062_v63 = vld [vmem:[%s3096_s9] ss:$0 sm:$0xff] }
 0x441   :  { %2293 = vmatprep.subr.bf16.mxu0 %v2529_v15 }
 0x447   :  { %2282 = vmatmul.mubr.msk.bf16.vlgmr.msra.gmra.mrb[12].mxu0 %vm246_vm3, %v593_v1 }
 0x448   :  { %2297 = vmatprep.mubr.msk.bf16.mxu0 %vm2530_vm1, %v2529_v15 }
 0x502   :  { %v297_v2 = vpop.f32.mrb[0].mxu0 }
 0x503   :  { %303 = vst.msk [vmem:[#allocation2] sm:$0xff] %vm191_vm2, %v297_v2  ;;  %v2247_v3 = vpop.f32.mrb[1].mxu0 }
 0x504   :  { %v300_v4 = vpop.f32.mrb[2].mxu0 }
 0x505   :  { %v2248_v5 = vpop.f32.mrb[3].mxu0  ;;  %v2443_v4 = vld [vmem:[%s3097_s12] sm:$0xff]  }
 0x506   :  { %v2444_v5 = vld [vmem:[%s3097_s12 + $0x8] sm:$0xff]  }
 0x50a   :  { %v407_v6 = vpop.f32.mrb[4].mxu0 }
 0x50b   :  { %414 = vrot.lane.b32.xlu0 %v407_v6, %s2536_s29  ;;  %v2259_v7 = vpop.f32.mrb[5].mxu0  ;;  %v2445_v6 = vld [vmem:[%s3097_s12 + $0x10] sm:$0xff]  }
 0x50c   :  { %v410_v8 = vpop.f32.mrb[6].mxu0  ;;  %v2446_v7 = vld [vmem:[%s3097_s12 + $0x18] sm:$0xff]  }
 0x50d   :  { %v2260_v9 = vpop.f32.mrb[7].mxu0  ;;  %v2447_v8 = vld [vmem:[%s3097_s12 + $0x20] sm:$0xff]  }
 0x50e   :  { %v2448_v9 = vld [vmem:[%s3097_s12 + $0x28] sm:$0xff]  }
 0x512   :  { %v526_v13 = vpop.f32.mrb[8].mxu0 }
 0x513   :  { %532 = vst.msk [vmem:[#allocation2 + $0x8] sm:$0xff] %vm191_vm2, %v526_v13  ;;  %v2271_v14 = vpop.f32.mrb[9].mxu0  ;;  %v2063_v13 = vld [vmem:[%s3098_s11] ss:$0 sm:$0xff] }
 0x514   :  { %v529_v16 = vpop.f32.mrb[10].mxu0 }
 0x515   :  { %v2272_v17 = vpop.f32.mrb[11].mxu0 }
 0x51a   :  { %v636_v18 = vpop.f32.mrb[12].mxu0 }
 0x51b   :  { %643 = vrot.lane.b32.xlu1 %v636_v18, %s2536_s29  ;;  %v2283_v19 = vpop.f32.mrb[13].mxu0 }
 0x51c   :  { %v639_v20 = vpop.f32.mrb[14].mxu0 }
 0x51d   :  { %v2284_v21 = vpop.f32.mrb[15].mxu0 }
 0x57d   :  { %v415_v22 = vpop.permute.xlu0 %414 }
 0x57e   :  { %418 = vst.msk [vmem:[#allocation2] sm:$0xff] %vm417_vm5, %v415_v22 }
 0x585   :  { %v647_v24 = vld [vmem:[#allocation2] sm:$0xff] }
 0x58d   :  { %v644_v23 = vpop.permute.xlu1 %643 }
 0x58e   :  { %646 = vst.msk [vmem:[#allocation2 + $0x8] sm:$0xff] %vm417_vm5, %v644_v23 }
 0x595   :  { %v648_v25 = vld [vmem:[#allocation2 + $0x8] sm:$0xff] }
 0x596   :  { %v649_v26 = vpack.c.bf16 %v648_v25, %v647_v24 }
 0x598   :  { %2290 = vmatmul.mubr.msk.bf16.vlgmr.msra.gmra.mrb[20].mxu1 %vm75_vm0, %v649_v26 }
 0x599   :  { %2317 = vmatprep.mubr.msk.bf16.mxu1 %vm2530_vm1, %v2529_v15  ;;  %2302 = vmatpush3.bf16.msra.mxu1 %v2443_v4 }
 0x59a   :  { %2303 = vmatprep.subr.bf16.mxu1 %v2529_v15 }
 0x59d   :  { %2304 = vmatpush3.bf16.msra.mxu1 %v2444_v5 }
 0x59e   :  { %2305 = vmatprep.subr.bf16.mxu1 %v2529_v15 }
 0x5a1   :  { %2306 = vmatpush3.bf16.msra.mxu1 %v2445_v6 }
 0x5a2   :  { %2307 = vmatprep.subr.bf16.mxu1 %v2529_v15 }
 0x5a5   :  { %2308 = vmatpush3.bf16.msra.mxu1 %v2446_v7  ;;  %v2076_v7 = vld [vmem:[%s3100_s14] ss:$0 sm:$0xff] }
 0x5a6   :  { %2309 = vmatprep.subr.bf16.mxu1 %v2529_v15 }
 0x5a9   :  { %2310 = vmatpush3.bf16.msra.mxu1 %v2447_v8 }
 0x5aa   :  { %2311 = vmatprep.subr.bf16.mxu1 %v2529_v15 }
 0x5ad   :  { %2312 = vmatpush3.bf16.msra.mxu1 %v2448_v9 }
 0x5ae   :  { %2313 = vmatprep.subr.bf16.mxu1 %v2529_v15 }
 0x5b1   :  { %2314 = vmatpush3.bf16.msra.mxu1 %v2449_v10 }
 0x5b2   :  { %2315 = vmatprep.subr.bf16.mxu1 %v2529_v15 }
 0x5b5   :  { %2316 = vmatpush3.bf16.msra.mxu1 %v2450_v12 }
 0x5b6   :  { %2347 = vmatprep.subr.bf16.mxu1 %v2529_v15 }
 0x66b   :  { %v710_v28 = vpop.f32.mrb[20].mxu1 }
 0x66c   :  { %v711_v29 = vadd.f32 %v2057_v27, %v710_v28  ;;  %v2291_v30 = vpop.f32.mrb[21].mxu1 }
 0x66d   :  { %v713_v33 = vpop.f32.mrb[22].mxu1 }
 0x66e   :  { %v714_v34 = vadd.f32 %v2057_v27, %v713_v33  ;;  %v2292_v35 = vpop.f32.mrb[23].mxu1  ;;  %v717_v36 = vadd.f32 %v711_v29, %v2672_v31 }
 0x670   :  { %v721_v37 = vsel %vm75_vm0, %v717_v36, 0.0  ;;  %v718_v38 = vadd.f32 %v714_v34, %v2674_v32  ;;  %v2441_v32 = vld [vmem:[%s3094_s10] sm:$0xff]  }
 0x671   :  { %722 = vadd.xlane.f32.xlu0 %v721_v37  ;;  %2294 = vmatpush3.bf16.msra.mxu0 %v2441_v32 }
 0x672   :  { %v724_v40 = vsel %vm75_vm0, %v718_v38, 0.0  ;;  %2295 = vmatprep.subr.bf16.mxu0 %v2529_v15 }
 0x673   :  { %725 = vadd.xlane.f32.xlu1 %v724_v40 }
 0x675   :  { %2296 = vmatpush3.bf16.msra.mxu0 %v2442_v42 }
 0x676   :  { %2321 = vmatprep.subr.bf16.mxu0 %v2529_v15 }
 0x6fe   :  { %v723_v41 = vpop.xlane.xlu0 %722 }
 0x6ff   :  { %v727_v43 = vmul.f32 0.03125, %v723_v41 }
 0x700   :  { %v726_v44 = vpop.xlane.xlu1 %725 }
 0x701   :  { %v729_v45 = vsub.f32 %v717_v36, %v727_v43  ;;  %v728_v46 = vmul.f32 0.03125, %v726_v44  ;;  %v2067_v44 = vld [vmem:[%s3099_s13] ss:$0 sm:$0xff] }
 0x703   :  { %v730_v47 = vsub.f32 %v718_v38, %v728_v46  ;;  %v731_v48 = vmul.f32 %v729_v45, %v729_v45 }
 0x705   :  { %v733_v49 = vsel %vm75_vm0, %v731_v48, 0.0  ;;  %v732_v50 = vmul.f32 %v730_v47, %v730_v47 }
 0x706   :  { %734 = vadd.xlane.f32.xlu0 %v733_v49 }
 0x707   :  { %v736_v31 = vsel %vm75_vm0, %v732_v50, 0.0 }
 0x70a   :  { %737 = vadd.xlane.f32.xlu0 %v736_v31 }
 0x793   :  { %v735_v39 = vpop.xlane.xlu0 %734 }
 0x794   :  { %v739_v51 = vmul.f32 0.03125, %v735_v39 }
 0x796   :  { %v741_v52 = vadd.f32 1e-12, %v739_v51 }
 0x797   :  { %v738_v53 = vpop.xlane.xlu0 %737 }
 0x798   :  { %2489 = vrsqrt.f32 %v741_v52  ;;  %v740_v54 = vmul.f32 0.03125, %v738_v53 }
 0x79a   :  { %v742_v55 = vadd.f32 1e-12, %v740_v54 }
 0x79c   :  { %2491 = vrsqrt.f32 %v742_v55 }
 0x7a2   :  { %v2490_v56 = vpop.eup %2489 }
 0x7a3   :  { %v745_v57 = vmul.f32 %v2490_v56, %v729_v45 }
 0x7a5   :  { %v753_v61 = vmul.f32 %v2061_v58, %v745_v57 }
 0x7a6   :  { %v2492_v60 = vpop.eup %2491 }
 0x7a7   :  { %v746_v62 = vmul.f32 %v2492_v60, %v730_v47  ;;  %v2805_v1 = vadd.f32 %v2062_v63, %v753_v61 }
 0x7a9   :  { %v754_v0 = vmul.f32 %v2061_v58, %v746_v62  ;;  %v2451_v62 = vld [vmem:[%s3116_s26 + $0x10] sm:$0xff]  }
 0x7ab   :  { %v2807_v2 = vadd.f32 %v2062_v63, %v754_v0  ;;  %v2452_v63 = vld [vmem:[%s3116_s26 + $0x18] sm:$0xff]  }
 0x7ad   :  { %v763_v3 = vpack.c.bf16 %v2807_v2, %v2805_v1 }
 0x7af   :  { %2298 = vmatmul.mubr.msk.bf16.vlgmr.msra.gmra.mrb[16].mxu0 %vm75_vm0, %v763_v3 }
 0x7b0   :  { %2325 = vmatprep.mubr.msk.bf16.mxu0 %vm2530_vm1, %v2529_v15  ;;  %2322 = vmatpush3.bf16.msra.mxu0 %v2451_v62 }
 0x7b1   :  { %2323 = vmatprep.subr.bf16.mxu0 %v2529_v15 }
 0x7b4   :  { %2324 = vmatpush3.bf16.msra.mxu0 %v2452_v63 }
 0x7b5   :  { %2329 = vmatprep.subr.bf16.mxu0 %v2529_v15 }
 0x882   :  { %v824_v14 = vpop.f32.mrb[16].mxu0 }
 0x883   :  { %v825_v16 = vadd.f32 %v2063_v13, %v824_v14  ;;  %v2299_v17 = vpop.f32.mrb[17].mxu0 }
 0x884   :  { %v827_v18 = vpop.f32.mrb[18].mxu0 }
 0x885   :  { %v833_v19 = vmul.f32 0.044715, %v825_v16  ;;  %v828_v20 = vadd.f32 %v2063_v13, %v827_v18  ;;  %v2300_v21 = vpop.f32.mrb[19].mxu0  ;;  %v831_v36 = vmul.f32 0.5, %v825_v16  ;;  %v2077_v13 = vld [vmem:[%s3101_s15] ss:$0 sm:$0xff] }
 0x887   :  { %v835_v22 = vmul.f32 %v833_v19, %v825_v16  ;;  %v834_v23 = vmul.f32 0.044715, %v828_v20  ;;  %v832_v37 = vmul.f32 0.5, %v828_v20  ;;  %v2083_v19 = vld [vmem:[%s3119_s24 + $0x1] ss:$0 sm:$0xff] }
 0x889   :  { %v837_v24 = vmul.f32 %v835_v22, %v825_v16  ;;  %v836_v25 = vmul.f32 %v834_v23, %v828_v20 }
 0x88b   :  { %v839_v26 = vadd.f32 %v837_v24, %v825_v16  ;;  %v838_v27 = vmul.f32 %v836_v25, %v828_v20 }
 0x88d   :  { %v841_v28 = vmul.f32 0.7978846, %v839_v26  ;;  %v840_v29 = vadd.f32 %v838_v27, %v828_v20 }
 0x88f   :  { %2493 = vtanh.f32 %v841_v28  ;;  %v842_v30 = vmul.f32 0.7978846, %v840_v29 }
 0x891   :  { %2495 = vtanh.f32 %v842_v30 }
 0x899   :  { %v2494_v33 = vpop.eup %2493 }
 0x89a   :  { %v845_v34 = vadd.f32 1.0, %v2494_v33 }
 0x89b   :  { %v2496_v35 = vpop.eup %2495 }
 0x89c   :  { %v846_v38 = vadd.f32 1.0, %v2496_v35  ;;  %v847_v40 = vmul.f32 %v845_v34, %v831_v36 }
 0x89e   :  { %v848_v41 = vmul.f32 %v846_v38, %v832_v37 }
 0x8a0   :  { %v849_v43 = vpack.c.bf16 %v848_v41, %v847_v40 }
 0x8a2   :  { %2318 = vmatmul.mubr.bf16.vlgmr.msra.gmra.mrb[24].mxu1 %v849_v43 }
 0x8a3   :  { %2349 = vmatprep.mubr.msk.bf16.mxu1 %vm2530_vm1, %v2529_v15 }
 0x975   :  { %v955_v45 = vpop.f32.mrb[24].mxu1 }
 0x976   :  { %v956_v46 = vadd.f32 %v2067_v44, %v955_v45  ;;  %v2319_v47 = vpop.f32.mrb[25].mxu1 }
 0x977   :  { %v958_v48 = vpop.f32.mrb[26].mxu1 }
 0x978   :  { %v959_v49 = vadd.f32 %v2067_v44, %v958_v48  ;;  %v2320_v50 = vpop.f32.mrb[27].mxu1  ;;  %v962_v31 = vadd.f32 %v956_v46, %v2805_v1 }
 0x97a   :  { %v966_v32 = vsel %vm75_vm0, %v962_v31, 0.0  ;;  %v963_v42 = vadd.f32 %v959_v49, %v2807_v2 }
 0x97b   :  { %967 = vadd.xlane.f32.xlu0 %v966_v32 }
 0x97c   :  { %v969_v39 = vsel %vm75_vm0, %v963_v42, 0.0 }
 0x97d   :  { %970 = vadd.xlane.f32.xlu1 %v969_v39 }
 0xa08   :  { %v968_v51 = vpop.xlane.xlu0 %967 }
 0xa09   :  { %v972_v52 = vmul.f32 0.03125, %v968_v51 }
 0xa0a   :  { %v971_v53 = vpop.xlane.xlu1 %970 }
 0xa0b   :  { %v974_v54 = vsub.f32 %v962_v31, %v972_v52  ;;  %v973_v55 = vmul.f32 0.03125, %v971_v53 }
 0xa0d   :  { %v975_v56 = vsub.f32 %v963_v42, %v973_v55  ;;  %v976_v57 = vmul.f32 %v974_v54, %v974_v54 }
 0xa0f   :  { %v978_v58 = vsel %vm75_vm0, %v976_v57, 0.0  ;;  %v977_v60 = vmul.f32 %v975_v56, %v975_v56 }
 0xa10   :  { %979 = vadd.xlane.f32.xlu0 %v978_v58 }
 0xa11   :  { %v981_v61 = vsel %vm75_vm0, %v977_v60, 0.0 }
 0xa12   :  { %982 = vadd.xlane.f32.xlu1 %v981_v61 }
 0xa9d   :  { %v980_v0 = vpop.xlane.xlu0 %979 }
 0xa9e   :  { %v984_v1 = vmul.f32 0.03125, %v980_v0 }
 0xa9f   :  { %v983_v2 = vpop.xlane.xlu1 %982 }
 0xaa0   :  { %v986_v3 = vadd.f32 1e-12, %v984_v1  ;;  %v985_v4 = vmul.f32 0.03125, %v983_v2 }
 0xaa2   :  { %2497 = vrsqrt.f32 %v986_v3  ;;  %v987_v5 = vadd.f32 1e-12, %v985_v4 }
 0xaa4   :  { %2499 = vrsqrt.f32 %v987_v5 }
 0xaac   :  { %v2498_v6 = vpop.eup %2497 }
 0xaad   :  { %v990_v8 = vmul.f32 %v2498_v6, %v974_v54 }
 0xaae   :  { %v2500_v9 = vpop.eup %2499 }
 0xaaf   :  { %v998_v10 = vmul.f32 %v2076_v7, %v990_v8  ;;  %v991_v12 = vmul.f32 %v2500_v9, %v975_v56 }
 0xab1   :  { %v999_v14 = vmul.f32 %v2076_v7, %v991_v12  ;;  %v2874_v16 = vadd.f32 %v2077_v13, %v998_v10 }
 0xab3   :  { %v2876_v17 = vadd.f32 %v2077_v13, %v999_v14 }
 0xab5   :  { %v1008_v18 = vpack.c.bf16 %v2876_v17, %v2874_v16 }
 0xab7   :  { %2326 = vmatmul.mubr.msk.bf16.vlgmr.msra.gmra.mrb[20].mxu0 %vm75_vm0, %v1008_v18 }
 0xab8   :  { %2331 = vmatprep.mubr.msk.bf16.mxu0 %vm2530_vm1, %v2529_v15 }
 0xb8a   :  { %v1071_v20 = vpop.f32.mrb[20].mxu0 }
 0xb8b   :  { %v1072_v21 = vadd.f32 %v2083_v19, %v1071_v20  ;;  %v2327_v22 = vpop.f32.mrb[21].mxu0 }
 0xb8c   :  { %v1074_v23 = vpop.f32.mrb[22].mxu0 }
 0xb8d   :  { %v2886_v24 = vpack.c.bf16 %v1072_v21, %v1072_v21  ;;  %v2328_v25 = vpop.f32.mrb[23].mxu0  ;;  %v1075_v26 = vadd.f32 %v2083_v19, %v1074_v23 }
 0xb8f   :  { %1139 = vrot.lane.b32.xlu1 %v2886_v24, %s2535_s5  ;;  %1080 = vrot.lane.b32.xlu0 %v2886_v24, %s2532_s25  ;;  %v2894_v27 = vpack.c.bf16 %v1075_v26, %v1075_v26 }
 0xb93   :  { %1188 = vrot.lane.b32.xlu0 %v2886_v24, %s2533_s3 }
 0xb97   :  { %1414 = vrot.lane.b32.xlu0 %v2894_v27, %s2531_s2 }
 0xc01   :  { %v1081_v28 = vpop.permute.xlu0 %1080  ;;  %v1140_v30 = vpop.permute.xlu1 %1139 }
 0xc02   :  { %v1086_v29 = vsel %vm191_vm2, %v1081_v28, 0  ;;  %v1145_v33 = vsel %vm259_vm4, %v1140_v30, 0 }
 0xc03   :  { %2330 = vmatpush3.bf16.xpose.msra.mxu0 %v1086_v29 }
 0xc04   :  { %2335 = vmatprep.subr.bf16.mxu0 %v2529_v15 }
 0xc05   :  { %v1189_v42 = vpop.permute.xlu0 %1188 }
 0xc09   :  { %v1415_v51 = vpop.permute.xlu0 %1414 }
 0xc0a   :  { %2332 = vmatmul.mubr.msk.bf16.vlgmr.msra.gmra.mrb[24].mxu0 %vm191_vm2, %v2886_v24  ;;  %v1420_v52 = vsel %vm191_vm2, %v1415_v51, 0 }
 0xc0b   :  { %2336 = vmatpush3.bf16.msra.mxu0 %v1145_v33  ;;  %2337 = vmatprep.mubr.msk.bf16.mxu0 %vm2530_vm1, %v2529_v15 }
 0xc0c   :  { %2341 = vmatprep.subr.bf16.mxu0 %v2529_v15 }
 0xcdd   :  { %v1122_v34 = vpop.f32.mrb[24].mxu0 }
 0xcde   :  { %v1128_v35 = vmul.f32 0.25, %v1122_v34  ;;  %v2333_v36 = vpop.f32.mrb[25].mxu0 }
 0xcdf   :  { %v1125_v37 = vpop.f32.mrb[26].mxu0 }
 0xce0   :  { %v1129_v38 = vadd.f32 %v1128_v35, %v2725_v59  ;;  %v2334_v40 = vpop.f32.mrb[27].mxu0 }
 0xce2   :  { %v1130_v41 = vmul.f32 1.442695, %v1129_v38 }
 0xce4   :  { %2501 = vpow2.f32 %v1130_v41 }
 0xcee   :  { %v2502_v43 = vpop.eup %2501 }
 0xcef   :  { %v1132_v44 = vsel %vm246_vm3, %v2502_v43, 0.0 }
 0xcf0   :  { %1133 = vadd.xlane.f32.xlu1 %v1132_v44 }
 0xd01   :  { %1190 = vrot.lane.b32.xlu1 %v2886_v24, %s2531_s2 }
 0xd05   :  { %1304 = vrot.lane.b32.xlu1 %v2894_v27, %s2532_s25 }
 0xd09   :  { %1412 = vrot.lane.b32.xlu1 %v2894_v27, %s2533_s3 }
 0xd7d   :  { %v1134_v45 = vpop.xlane.xlu1 %1133 }
 0xd7e   :  { %v1135_v46 = vmax.f32 %v1134_v45, 1e-20 }
 0xd80   :  { %2503 = vrcp.f32 %v1135_v46 }
 0xd81   :  { %v1191_v49 = vpop.permute.xlu1 %1190 }
 0xd82   :  { %v1196_v31 = vsel %vm191_vm2, %v1191_v49, 0 }
 0xd85   :  { %v1305_v32 = vpop.permute.xlu1 %1304 }
 0xd86   :  { %v1310_v39 = vsel %vm191_vm2, %v1305_v32, 0 }
 0xd89   :  { %v1413_v53 = vpop.permute.xlu1 %1412 }
 0xd8a   :  { %v2504_v47 = vpop.eup %2503 }
 0xd8b   :  { %v1137_v48 = vmul.f32 %v2504_v47, %v2502_v43 }
 0xd8d   :  { %v1138_v50 = vpack.c.bf16 %v1137_v48, %v1137_v48 }
 0xd8f   :  { %2338 = vmatmul.mubr.msk.bf16.vlgmr.msra.gmra.mrb[28].mxu0 %vm246_vm3, %v1138_v50 }
 0xd90   :  { %2342 = vmatpush3.bf16.xpose.msra.mxu0 %v1196_v31  ;;  %2343 = vmatprep.mubr.msk.bf16.mxu0 %vm2530_vm1, %v2529_v15 }
 0xd91   :  { %2353 = vmatprep.subr.bf16.mxu0 %v2529_v15 }
 0xd97   :  { %2344 = vmatmul.mubr.msk.bf16.vlgmr.msra.gmra.mrb[32].mxu0 %vm191_vm2, %v1189_v42  ;;  %v2453_v42 = vld [vmem:[%s3092_s6 + $0x10] sm:$0xff]  }
 0xd98   :  { %2354 = vmatpush3.bf16.xpose.msra.mxu0 %v1310_v39  ;;  %2355 = vmatprep.mubr.msk.bf16.mxu0 %vm2530_vm1, %v2529_v15  ;;  %v2454_v39 = vld [vmem:[%s3092_s6 + $0x18] sm:$0xff]  }
 0xd99   :  { %2365 = vmatprep.subr.bf16.mxu0 %v2529_v15 }
 0xd9f   :  { %2356 = vmatmul.mubr.msk.bf16.vlgmr.msra.gmra.mrb[36].mxu0 %vm191_vm2, %v2894_v27 }
 0xda0   :  { %2366 = vmatpush3.bf16.xpose.msra.mxu0 %v1420_v52  ;;  %2367 = vmatprep.mubr.msk.bf16.mxu0 %vm2530_vm1, %v2529_v15 }
 0xda1   :  { %2377 = vmatprep.subr.bf16.mxu0 %v2529_v15 }
 0xda7   :  { %2368 = vmatmul.mubr.msk.bf16.vlgmr.msra.gmra.mrb[40].mxu0 %vm191_vm2, %v1413_v53 }
 0xda8   :  { %2381 = vmatprep.mubr.msk.bf16.mxu0 %vm2530_vm1, %v2529_v15  ;;  %2378 = vmatpush3.bf16.msra.mxu0 %v2453_v42  ;;  %v2113_v42 = vld [vmem:[%s3098_s11 + $0x1] ss:$0 sm:$0xff] }
 0xda9   :  { %2379 = vmatprep.subr.bf16.mxu0 %v2529_v15 }
 0xdac   :  { %2380 = vmatpush3.bf16.msra.mxu0 %v2454_v39 }
 0xdad   :  { %2393 = vmatprep.subr.bf16.mxu0 %v2529_v15 }
 0xe62   :  { %v1181_v54 = vpop.f32.mrb[28].mxu0 }
 0xe63   :  { %1187 = vst.msk [vmem:[#allocation2] sm:$0xff] %vm191_vm2, %v1181_v54  ;;  %v2339_v55 = vpop.f32.mrb[29].mxu0 }
 0xe64   :  { %v1184_v56 = vpop.f32.mrb[30].mxu0 }
 0xe65   :  { %v2340_v57 = vpop.f32.mrb[31].mxu0 }
 0xe6a   :  { %v1232_v58 = vpop.f32.mrb[32].mxu0 }
 0xe6b   :  { %v1238_v60 = vmul.f32 0.25, %v1232_v58  ;;  %v2345_v61 = vpop.f32.mrb[33].mxu0 }
 0xe6c   :  { %v1235_v62 = vpop.f32.mrb[34].mxu0 }
 0xe6d   :  { %v1239_v63 = vadd.f32 %v1238_v60, %v2725_v59  ;;  %v2346_v0 = vpop.f32.mrb[35].mxu0 }
 0xe6f   :  { %v1240_v1 = vmul.f32 1.442695, %v1239_v63 }
 0xe71   :  { %2505 = vpow2.f32 %v1240_v1  ;;  %v2100_v1 = vld [vmem:[%s3093_s7 + $0x1] ss:$0 sm:$0xff] }
 0xe72   :  { %v1346_v2 = vpop.f32.mrb[36].mxu0 }
 0xe73   :  { %v1352_v3 = vmul.f32 0.25, %v1346_v2  ;;  %v2357_v4 = vpop.f32.mrb[37].mxu0 }
 0xe74   :  { %v1349_v5 = vpop.f32.mrb[38].mxu0 }
 0xe75   :  { %v1353_v6 = vadd.f32 %v1352_v3, %v2729_v11  ;;  %v2358_v7 = vpop.f32.mrb[39].mxu0 }
 0xe77   :  { %v1354_v8 = vmul.f32 1.442695, %v1353_v6 }
 0xe79   :  { %2507 = vpow2.f32 %v1354_v8 }
 0xe7a   :  { %v1456_v9 = vpop.f32.mrb[40].mxu0 }
 0xe7b   :  { %v2506_v10 = vpop.eup %2505  ;;  %v1462_v12 = vmul.f32 0.25, %v1456_v9  ;;  %v2369_v13 = vpop.f32.mrb[41].mxu0 }
 0xe7c   :  { %v1459_v14 = vpop.f32.mrb[42].mxu0  ;;  %v1242_v18 = vsel %vm246_vm3, %v2506_v10, 0.0 }
 0xe7d   :  { %v1463_v59 = vadd.f32 %v1462_v12, %v2729_v11  ;;  %1243 = vadd.xlane.f32.xlu0 %v1242_v18  ;;  %v2370_v19 = vpop.f32.mrb[43].mxu0 }
 0xe7f   :  { %v1464_v20 = vmul.f32 1.442695, %v1463_v59 }
 0xe81   :  { %2509 = vpow2.f32 %v1464_v20 }
 0xe83   :  { %v2508_v21 = vpop.eup %2507 }
 0xe84   :  { %v1356_v22 = vsel %vm246_vm3, %v2508_v21, 0.0 }
 0xe85   :  { %1357 = vadd.xlane.f32.xlu1 %v1356_v22 }
 0xe8b   :  { %v2510_v23 = vpop.eup %2509 }
 0xe8c   :  { %v1466_v25 = vsel %vm246_vm3, %v2510_v23, 0.0 }
 0xe8d   :  { %1467 = vadd.xlane.f32.xlu0 %v1466_v25  ;;  %v2456_v25 = vld [vmem:[%s3094_s10 + $0x18] sm:$0xff]  }
 0xe96   :  { %1363 = vrot.lane.b32.xlu1 %v2894_v27, %s2535_s5 }
 0xe9a   :  { %1473 = vrot.lane.b32.xlu1 %v2894_v27, %s2534_s1 }
 0xea3   :  { %1249 = vrot.lane.b32.xlu0 %v2886_v24, %s2534_s1 }
 0xf0a   :  { %v1244_v11 = vpop.xlane.xlu0 %1243 }
 0xf0b   :  { %v1245_v26 = vmax.f32 %v1244_v11, 1e-20 }
 0xf0d   :  { %2511 = vrcp.f32 %v1245_v26 }
 0xf12   :  { %v1358_v28 = vpop.xlane.xlu1 %1357 }
 0xf13   :  { %v1359_v29 = vmax.f32 %v1358_v28, 1e-20 }
 0xf15   :  { %2513 = vrcp.f32 %v1359_v29 }
 0xf16   :  { %v1364_v38 = vpop.permute.xlu1 %1363 }
 0xf17   :  { %v2512_v30 = vpop.eup %2511  ;;  %v1369_v40 = vsel %vm259_vm4, %v1364_v38, 0 }
 0xf18   :  { %v1247_v35 = vmul.f32 %v2512_v30, %v2506_v10 }
 0xf1a   :  { %v1468_v33 = vpop.xlane.xlu0 %1467  ;;  %v1248_v27 = vpack.c.bf16 %v1247_v35, %v1247_v35  ;;  %v1474_v43 = vpop.permute.xlu1 %1473 }
 0xf1b   :  { %v1469_v34 = vmax.f32 %v1468_v33, 1e-20  ;;  %v1479_v46 = vsel %vm259_vm4, %v1474_v43, 0 }
 0xf1d   :  { %2515 = vrcp.f32 %v1469_v34 }
 0xf1e   :  { %v1250_v36 = vpop.permute.xlu0 %1249 }
 0xf1f   :  { %v1255_v37 = vsel %vm259_vm4, %v1250_v36, 0  ;;  %v2514_v24 = vpop.eup %2513  ;;  %v2106_v36 = vld [vmem:[%s3095_s8 + $0x1] ss:$0 sm:$0xff] }
 0xf20   :  { %2348 = vmatpush3.bf16.msra.mxu1 %v1255_v37  ;;  %v1361_v41 = vmul.f32 %v2514_v24, %v2508_v21  ;;  %v2107_v24 = vld [vmem:[%s3096_s9 + $0x1] ss:$0 sm:$0xff] }
 0xf21   :  { %2359 = vmatprep.subr.bf16.mxu1 %v2529_v15 }
 0xf22   :  { %v1362_v44 = vpack.c.bf16 %v1361_v41, %v1361_v41 }
 0xf23   :  { %2350 = vmatmul.mubr.msk.bf16.vlgmr.msra.gmra.mrb[28].mxu1 %vm246_vm3, %v1248_v27 }
 0xf24   :  { %2360 = vmatpush3.bf16.msra.mxu1 %v1369_v40  ;;  %2361 = vmatprep.mubr.msk.bf16.mxu1 %vm2530_vm1, %v2529_v15 }
 0xf25   :  { %2371 = vmatprep.subr.bf16.mxu1 %v2529_v15 }
 0xf27   :  { %v2516_v45 = vpop.eup %2515 }
 0xf28   :  { %v1471_v47 = vmul.f32 %v2516_v45, %v2510_v23  ;;  %v2457_v45 = vld [vmem:[%s3097_s12 + $0x40] sm:$0xff]  }
 0xf2a   :  { %v1472_v48 = vpack.c.bf16 %v1471_v47, %v1471_v47  ;;  %v2459_v47 = vld [vmem:[%s3097_s12 + $0x50] sm:$0xff]  }
 0xf2b   :  { %2362 = vmatmul.mubr.msk.bf16.vlgmr.msra.gmra.mrb[32].mxu1 %vm246_vm3, %v1362_v44 }
 0xf2c   :  { %2372 = vmatpush3.bf16.msra.mxu1 %v1479_v46  ;;  %2373 = vmatprep.mubr.msk.bf16.mxu1 %vm2530_vm1, %v2529_v15  ;;  %v2458_v46 = vld [vmem:[%s3097_s12 + $0x48] sm:$0xff]  }
 0xf2d   :  { %2385 = vmatprep.subr.bf16.mxu1 %v2529_v15 }
 0xf33   :  { %2374 = vmatmul.mubr.msk.bf16.vlgmr.msra.gmra.mrb[36].mxu1 %vm246_vm3, %v1472_v48  ;;  %v2460_v48 = vld [vmem:[%s3097_s12 + $0x58] sm:$0xff]  }
 0xf34   :  { %2389 = vmatprep.mubr.msk.bf16.mxu1 %vm2530_vm1, %v2529_v15 }
 0xff6   :  { %v1291_v49 = vpop.f32.mrb[28].mxu1 }
 0xff7   :  { %1298 = vrot.lane.b32.xlu0 %v1291_v49, %s2536_s29  ;;  %v2351_v50 = vpop.f32.mrb[29].mxu1  ;;  %v2461_v49 = vld [vmem:[%s3097_s12 + $0x60] sm:$0xff]  }
 0xff8   :  { %v1294_v31 = vpop.f32.mrb[30].mxu1  ;;  %v2462_v50 = vld [vmem:[%s3097_s12 + $0x68] sm:$0xff]  }
 0xff9   :  { %v2352_v32 = vpop.f32.mrb[31].mxu1  ;;  %v2463_v31 = vld [vmem:[%s3097_s12 + $0x70] sm:$0xff]  }
 0xffa   :  { %v2464_v32 = vld [vmem:[%s3097_s12 + $0x78] sm:$0xff]  }
 0xffe   :  { %v1405_v51 = vpop.f32.mrb[32].mxu1 }
 0xfff   :  { %1411 = vst.msk [vmem:[#allocation2 + $0x8] sm:$0xff] %vm191_vm2, %v1405_v51  ;;  %v2363_v52 = vpop.f32.mrb[33].mxu1 }
0x1000   :  { %v1408_v53 = vpop.f32.mrb[34].mxu1 }
0x1001   :  { %v2364_v54 = vpop.f32.mrb[35].mxu1 }
0x1006   :  { %v1515_v55 = vpop.f32.mrb[36].mxu1 }
0x1007   :  { %1522 = vrot.lane.b32.xlu1 %v1515_v55, %s2536_s29  ;;  %v2375_v56 = vpop.f32.mrb[37].mxu1 }
0x1008   :  { %v1518_v57 = vpop.f32.mrb[38].mxu1 }
0x1009   :  { %v2376_v58 = vpop.f32.mrb[39].mxu1 }
0x1069   :  { %v1299_v60 = vpop.permute.xlu0 %1298 }
0x106a   :  { %1301 = vst.msk [vmem:[#allocation2] sm:$0xff] %vm417_vm5, %v1299_v60 }
0x1071   :  { %v1526_v62 = vld [vmem:[#allocation2] sm:$0xff] }
0x1079   :  { %v1523_v61 = vpop.permute.xlu1 %1522 }
0x107a   :  { %1525 = vst.msk [vmem:[#allocation2 + $0x8] sm:$0xff] %vm417_vm5, %v1523_v61 }
0x1081   :  { %v1527_v63 = vld [vmem:[#allocation2 + $0x8] sm:$0xff] }
0x1082   :  { %v1528_v0 = vpack.c.bf16 %v1527_v63, %v1526_v62 }
0x1084   :  { %2382 = vmatmul.mubr.msk.bf16.vlgmr.msra.gmra.mrb[44].mxu0 %vm75_vm0, %v1528_v0 }
0x1085   :  { %2409 = vmatprep.mubr.msk.bf16.mxu0 %vm2530_vm1, %v2529_v15  ;;  %2394 = vmatpush3.bf16.msra.mxu0 %v2457_v45 }
0x1086   :  { %2395 = vmatprep.subr.bf16.mxu0 %v2529_v15 }
0x1089   :  { %2396 = vmatpush3.bf16.msra.mxu0 %v2458_v46 }
0x108a   :  { %2397 = vmatprep.subr.bf16.mxu0 %v2529_v15 }
0x108d   :  { %2398 = vmatpush3.bf16.msra.mxu0 %v2459_v47 }
0x108e   :  { %2399 = vmatprep.subr.bf16.mxu0 %v2529_v15 }
0x1091   :  { %2400 = vmatpush3.bf16.msra.mxu0 %v2460_v48  ;;  %v2145_v48 = vld [vmem:[%s3100_s14 + $0x1] ss:$0 sm:$0xff] }
0x1092   :  { %2401 = vmatprep.subr.bf16.mxu0 %v2529_v15 }
0x1095   :  { %2402 = vmatpush3.bf16.msra.mxu0 %v2461_v49 }
0x1096   :  { %2403 = vmatprep.subr.bf16.mxu0 %v2529_v15 }
0x1099   :  { %2404 = vmatpush3.bf16.msra.mxu0 %v2462_v50 }
0x109a   :  { %2405 = vmatprep.subr.bf16.mxu0 %v2529_v15 }
0x109d   :  { %2406 = vmatpush3.bf16.msra.mxu0 %v2463_v31 }
0x109e   :  { %2407 = vmatprep.subr.bf16.mxu0 %v2529_v15 }
0x10a1   :  { %2408 = vmatpush3.bf16.msra.mxu0 %v2464_v32  ;;  %v2146_v32 = vld [vmem:[%s3101_s15 + $0x1] ss:$0 sm:$0xff] }
0x1157   :  { %v1591_v2 = vpop.f32.mrb[44].mxu0 }
0x1158   :  { %v1592_v3 = vadd.f32 %v2100_v1, %v1591_v2  ;;  %v2383_v4 = vpop.f32.mrb[45].mxu0 }
0x1159   :  { %v1594_v5 = vpop.f32.mrb[46].mxu0 }
0x115a   :  { %v1595_v6 = vadd.f32 %v2100_v1, %v1594_v5  ;;  %v2384_v7 = vpop.f32.mrb[47].mxu0  ;;  %v1598_v8 = vadd.f32 %v1592_v3, %v2874_v16 }
0x115c   :  { %v1604_v9 = vsel %vm75_vm0, %v1598_v8, 0.0  ;;  %v1599_v10 = vadd.f32 %v1595_v6, %v2876_v17  ;;  %v2455_v17 = vld [vmem:[%s3094_s10 + $0x10] sm:$0xff]  }
0x115d   :  { %1605 = vadd.xlane.f32.xlu0 %v1604_v9  ;;  %2386 = vmatpush3.bf16.msra.mxu1 %v2455_v17 }
0x115e   :  { %v1607_v12 = vsel %vm75_vm0, %v1599_v10, 0.0  ;;  %2387 = vmatprep.subr.bf16.mxu1 %v2529_v15 }
0x115f   :  { %1608 = vadd.xlane.f32.xlu1 %v1607_v12 }
0x1161   :  { %2388 = vmatpush3.bf16.msra.mxu1 %v2456_v25 }
0x1162   :  { %2413 = vmatprep.subr.bf16.mxu1 %v2529_v15 }
0x11ea   :  { %v1606_v13 = vpop.xlane.xlu0 %1605 }
0x11eb   :  { %v1610_v14 = vmul.f32 0.03125, %v1606_v13  ;;  %v2134_v13 = vld [vmem:[%s3099_s13 + $0x1] ss:$0 sm:$0xff] }
0x11ec   :  { %v1609_v18 = vpop.xlane.xlu1 %1608 }
0x11ed   :  { %v1612_v59 = vsub.f32 %v1598_v8, %v1610_v14  ;;  %v1611_v19 = vmul.f32 0.03125, %v1609_v18 }
0x11ef   :  { %v1613_v20 = vsub.f32 %v1599_v10, %v1611_v19  ;;  %v1614_v21 = vmul.f32 %v1612_v59, %v1612_v59 }
0x11f1   :  { %v1616_v22 = vsel %vm75_vm0, %v1614_v21, 0.0  ;;  %v1615_v23 = vmul.f32 %v1613_v20, %v1613_v20 }
0x11f2   :  { %1617 = vadd.xlane.f32.xlu0 %v1616_v22 }
0x11f3   :  { %v1619_v16 = vsel %vm75_vm0, %v1615_v23, 0.0 }
0x11f6   :  { %1620 = vadd.xlane.f32.xlu0 %v1619_v16 }
0x127f   :  { %v1618_v11 = vpop.xlane.xlu0 %1617 }
0x1280   :  { %v1622_v26 = vmul.f32 0.03125, %v1618_v11 }
0x1282   :  { %v1624_v28 = vadd.f32 1e-12, %v1622_v26 }
0x1283   :  { %v1621_v29 = vpop.xlane.xlu0 %1620 }
0x1284   :  { %2517 = vrsqrt.f32 %v1624_v28  ;;  %v1623_v30 = vmul.f32 0.03125, %v1621_v29 }
0x1286   :  { %v1625_v33 = vadd.f32 1e-12, %v1623_v30 }
0x1288   :  { %2519 = vrsqrt.f32 %v1625_v33 }
0x128e   :  { %v2518_v34 = vpop.eup %2517 }
0x128f   :  { %v1628_v35 = vmul.f32 %v2518_v34, %v1612_v59 }
0x1291   :  { %v1636_v38 = vmul.f32 %v2106_v36, %v1628_v35 }
0x1292   :  { %v2520_v37 = vpop.eup %2519 }
0x1293   :  { %v1629_v27 = vmul.f32 %v2520_v37, %v1613_v20  ;;  %v3000_v41 = vadd.f32 %v2107_v24, %v1636_v38  ;;  %v2465_v37 = vld [vmem:[%s3102_s16] sm:$0xff]   ;;  %v2466_v38 = vld [vmem:[%s3102_s16 + $0x8] sm:$0xff]  }
0x1295   :  { %v1637_v40 = vmul.f32 %v2106_v36, %v1629_v27 }
0x1297   :  { %v3002_v43 = vadd.f32 %v2107_v24, %v1637_v40 }
0x1299   :  { %v1646_v44 = vpack.c.bf16 %v3002_v43, %v3000_v41 }
0x129b   :  { %2390 = vmatmul.mubr.msk.bf16.vlgmr.msra.gmra.mrb[40].mxu1 %vm75_vm0, %v1646_v44 }
0x129c   :  { %2417 = vmatprep.mubr.msk.bf16.mxu1 %vm2530_vm1, %v2529_v15  ;;  %2414 = vmatpush3.bf16.msra.mxu1 %v2465_v37 }
0x129d   :  { %2415 = vmatprep.subr.bf16.mxu1 %v2529_v15 }
0x12a0   :  { %2416 = vmatpush3.bf16.msra.mxu1 %v2466_v38 }
0x12a1   :  { %2421 = vmatprep.subr.bf16.mxu1 %v2529_v15 }
0x136e   :  { %v1709_v39 = vpop.f32.mrb[40].mxu1 }
0x136f   :  { %v1710_v51 = vadd.f32 %v2113_v42, %v1709_v39  ;;  %v2391_v52 = vpop.f32.mrb[41].mxu1 }
0x1370   :  { %v1712_v53 = vpop.f32.mrb[42].mxu1 }
0x1371   :  { %v1718_v54 = vmul.f32 0.044715, %v1710_v51  ;;  %v1713_v55 = vadd.f32 %v2113_v42, %v1712_v53  ;;  %v2392_v56 = vpop.f32.mrb[43].mxu1  ;;  %v1716_v6 = vmul.f32 0.5, %v1710_v51 }
0x1372   :  { %v25_v56 = vstv %s3104_s19 }
0x1373   :  { %v1720_v57 = vmul.f32 %v1718_v54, %v1710_v51  ;;  %v1719_v58 = vmul.f32 0.044715, %v1713_v55  ;;  %v1717_v7 = vmul.f32 0.5, %v1713_v55  ;;  %v2467_v54 = vld [vmem:[%s3103_s18] sm:$0xff]   ;;  %26 = vst [vmem:[#allocation3] sm:$0x1] %v25_v56 }
0x1375   :  { %v1722_v60 = vmul.f32 %v1720_v57, %v1710_v51  ;;  %v1721_v61 = vmul.f32 %v1719_v58, %v1713_v55  ;;  %v2147_v57 = vld [vmem:[%s3105_s17] ss:$0 sm:$0xff] }
0x1377   :  { %v1724_v62 = vadd.f32 %v1722_v60, %v1710_v51  ;;  %v1723_v63 = vmul.f32 %v1721_v61, %v1713_v55 }
0x1379   :  { %v1726_v0 = vmul.f32 0.7978846, %v1724_v62  ;;  %v1725_v1 = vadd.f32 %v1723_v63, %v1713_v55  ;;  %v2468_v55 = vld [vmem:[%s3103_s18 + $0x8] sm:$0xff]  }
0x137b   :  { %2521 = vtanh.f32 %v1726_v0  ;;  %v1727_v2 = vmul.f32 0.7978846, %v1725_v1  ;;  %v2151_v1 = vld [vmem:[#allocation3] ss:$0 sm:$0xff] }
0x137d   :  { %2523 = vtanh.f32 %v1727_v2 }
0x1385   :  { %v2522_v3 = vpop.eup %2521 }
0x1386   :  { %v1730_v4 = vadd.f32 1.0, %v2522_v3 }
0x1387   :  { %v2524_v5 = vpop.eup %2523 }
0x1388   :  { %v1731_v8 = vadd.f32 1.0, %v2524_v5  ;;  %v1732_v9 = vmul.f32 %v1730_v4, %v1716_v6 }
0x138a   :  { %v1733_v10 = vmul.f32 %v1731_v8, %v1717_v7 }
0x138c   :  { %v1734_v12 = vpack.c.bf16 %v1733_v10, %v1732_v9 }
0x138e   :  { %2410 = vmatmul.mubr.bf16.vlgmr.msra.gmra.mrb[48].mxu0 %v1734_v12 }
0x1461   :  { %v1842_v14 = vpop.f32.mrb[48].mxu0 }
0x1462   :  { %v1843_v18 = vadd.f32 %v2134_v13, %v1842_v14  ;;  %v2411_v59 = vpop.f32.mrb[49].mxu0 }
0x1463   :  { %v1845_v19 = vpop.f32.mrb[50].mxu0 }
0x1464   :  { %v1846_v20 = vadd.f32 %v2134_v13, %v1845_v19  ;;  %v2412_v21 = vpop.f32.mrb[51].mxu0  ;;  %v1849_v22 = vadd.f32 %v1843_v18, %v3000_v41 }
0x1466   :  { %v1855_v23 = vsel %vm75_vm0, %v1849_v22, 0.0  ;;  %v1850_v16 = vadd.f32 %v1846_v20, %v3002_v43 }
0x1467   :  { %1856 = vadd.xlane.f32.xlu1 %v1855_v23 }
0x1468   :  { %v1858_v17 = vsel %vm75_vm0, %v1850_v16, 0.0 }
0x1469   :  { %1859 = vadd.xlane.f32.xlu0 %v1858_v17 }
0x14f4   :  { %v1857_v25 = vpop.xlane.xlu1 %1856 }
0x14f5   :  { %v1861_v11 = vmul.f32 0.03125, %v1857_v25 }
0x14f6   :  { %v1860_v26 = vpop.xlane.xlu0 %1859 }
0x14f7   :  { %v1863_v28 = vsub.f32 %v1849_v22, %v1861_v11  ;;  %v1862_v29 = vmul.f32 0.03125, %v1860_v26 }
0x14f9   :  { %v1864_v30 = vsub.f32 %v1850_v16, %v1862_v29  ;;  %v1865_v33 = vmul.f32 %v1863_v28, %v1863_v28 }
0x14fb   :  { %v1867_v34 = vsel %vm75_vm0, %v1865_v33, 0.0  ;;  %v1866_v35 = vmul.f32 %v1864_v30, %v1864_v30 }
0x14fc   :  { %1868 = vadd.xlane.f32.xlu1 %v1867_v34 }
0x14fd   :  { %v1870_v36 = vsel %vm75_vm0, %v1866_v35, 0.0 }
0x14fe   :  { %1871 = vadd.xlane.f32.xlu0 %v1870_v36 }
0x1589   :  { %v1869_v27 = vpop.xlane.xlu1 %1868 }
0x158a   :  { %v1873_v24 = vmul.f32 0.03125, %v1869_v27 }
0x158b   :  { %v1872_v40 = vpop.xlane.xlu0 %1871 }
0x158c   :  { %v1875_v41 = vadd.f32 1e-12, %v1873_v24  ;;  %v1874_v43 = vmul.f32 0.03125, %v1872_v40 }
0x158e   :  { %2525 = vrsqrt.f32 %v1875_v41  ;;  %v1876_v44 = vadd.f32 1e-12, %v1874_v43 }
0x1590   :  { %2527 = vrsqrt.f32 %v1876_v44 }
0x1598   :  { %v2526_v45 = vpop.eup %2525 }
0x1599   :  { %v1879_v46 = vmul.f32 %v2526_v45, %v1863_v28 }
0x159a   :  { %v2528_v47 = vpop.eup %2527 }
0x159b   :  { %v1880_v49 = vmul.f32 %v2528_v47, %v1864_v30  ;;  %v1887_v50 = vmul.f32 %v2145_v48, %v1879_v46 }
0x159d   :  { %v1888_v31 = vmul.f32 %v2145_v48, %v1880_v49  ;;  %v1895_v39 = vadd.f32 %v2146_v32, %v1887_v50 }
0x159f   :  { %v1896_v42 = vadd.f32 %v2146_v32, %v1888_v31 }
0x15a1   :  { %v1898_v51 = vrot.slane %v1896_v42, 7 }
0x15a3   :  { %v1901_v52 = vsel %vm1900_vm6, %v1895_v39, %v1898_v51 }
0x15a4   :  { %v1902_v53 = vpack.c.bf16 %v1901_v52, %v1901_v52 }
0x15a6   :  { %2418 = vmatmul.mubr.msk.bf16.vlgmr.msra.gmra.mrb[44].mxu1 %vm75_vm0, %v1902_v53 }
0x15a7   :  { %2425 = vmatprep.mubr.msk.bf16.mxu1 %vm2530_vm1, %v2529_v15  ;;  %2422 = vmatpush3.bf16.msra.mxu1 %v2467_v54 }
0x15a8   :  { %2423 = vmatprep.subr.bf16.mxu1 %v2529_v15 }
0x15ab   :  { %2424 = vmatpush3.bf16.msra.mxu1 %v2468_v55 }
0x1679   :  { %v1963_v58 = vpop.f32.mrb[44].mxu1 }
0x167a   :  { %v1964_v60 = vadd.f32 %v2147_v57, %v1963_v58  ;;  %v2419_v61 = vpop.f32.mrb[45].mxu1 }
0x167b   :  { %v1966_v62 = vpop.f32.mrb[46].mxu1 }
0x167c   :  { %v1969_v63 = vmax.f32 %v1964_v60, 0.0  ;;  %v2420_v15 = vpop.f32.mrb[47].mxu1 }
0x167e   :  { %v1970_v0 = vpack.c.bf16 %v1969_v63, %v1969_v63 }
0x1680   :  { %2426 = vmatmul.mubr.msk.bf16.vlgmr.msra.gmra.mrb[48].mxu1 %vm75_vm0, %v1970_v0 }
0x1753   :  { %v2031_v2 = vpop.f32.mrb[48].mxu1 }
0x1754   :  { %v2032_v3 = vadd.f32 %v2151_v1, %v2031_v2  ;;  %v2427_v4 = vpop.f32.mrb[49].mxu1 }
0x1755   :  { %v2034_v5 = vpop.f32.mrb[50].mxu1 }
0x1756   :  { %2038 = vst.msk [vmem:[%s3106_s20] sm:$0x3] %vm2037_vm7, %v2032_v3  ;;  %v2428_v6 = vpop.f32.mrb[51].mxu1 }

</bundles_post_ra>
